<compile_context>
chip_gen: v7x
topology: tpu7x:2x2x1
jax: 0.10.0
libtpu: 0.0.40
codegen_flags: <defaults>
</compile_context>

<pallas_src>
import jax
import jax.numpy as jnp
from jax.experimental import pallas as pl
from jax.experimental.pallas import tpu as pltpu

BN_EPS = 1e-5


# ------------------------------- fused kernel (Bt images / grid step) -------------------------------
def _fpn_head_kernel(x_ref, pt_ref, w1_ref, b1_ref, w2_ref, b2_ref, r4_ref, r5_ref):
    # x_ref : (Bt, C_in, S)    f32   input feature maps, spatial flattened onto lanes
    # pt_ref: (Sd, S)          bf16  one-hot stride-2 selection matrix (transposed)
    # w1_ref: (C_in, C_out)    bf16  downsample4 1x1 conv weight with eval-BN scale folded, transposed
    # b1_ref: (1, C_out)       f32   downsample4 folded BN bias
    # w2_ref: (C_out, C_out)   bf16  layer4 stand-in weight with eval-BN scale folded, transposed
    # b2_ref: (1, C_out)       f32   layer4 stand-in folded BN bias
    # r4_ref: (Bt, C_in)       f32   feat_res4 (lane-dense)
    # r5_ref: (Bt, C_out)      f32   feat_res5 (lane-dense)
    xf = x_ref[...]                                   # (Bt, C_in, S) f32
    bt = xf.shape[0]
    sd = pt_ref.shape[0]

    # feat_res4: exact f32 global spatial amax of the input.
    r4_ref[...] = jnp.max(xf, axis=-1)                # (Bt, C_in)

    # In-kernel stride-2 subsample, channels-last:  xs_b^T (Sd, C_in) = P^T . x_b^T  (A.B^T on MXU).
    pt = pt_ref[...]
    xb = xf.astype(jnp.bfloat16)
    xs_rows = [
        jax.lax.dot_general(pt, xb[b], (((1,), (1,)), ((), ())),
                            preferred_element_type=jnp.float32)
        for b in range(bt)
    ]
    xs = jnp.concatenate(xs_rows, axis=0).astype(jnp.bfloat16)       # (Bt*Sd, C_in)

    # downsample4: 1x1 stride-2 conv + folded eval-BN  ==  one MXU matmul, M = Bt*Sd, N = C_out lanes.
    d = jnp.dot(xs, w1_ref[...], preferred_element_type=jnp.float32) + b1_ref[...]

    # layer4 stand-in: 1x1 conv + folded BN, residual add, ReLU.
    a = jnp.maximum(d, 0.0).astype(jnp.bfloat16)
    h = jnp.dot(a, w2_ref[...], preferred_element_type=jnp.float32) + b2_ref[...]
    feat = jnp.maximum(d + h, 0.0)                                   # (Bt*Sd, C_out) f32

    # feat_res5: per-image global spatial amax, written lane-dense (never round-trips HBM).
    r5_ref[...] = jnp.max(feat.reshape(bt, sd, -1), axis=1)          # (Bt, C_out)


# ---------------------------------------------- helpers ----------------------------------------------
def _pick_bt(B, target=8):
    """Largest divisor of B that is <= min(target, B//2): amortizes per-step overhead while
    keeping >= 2 grid steps so both v7x TensorCores get work."""
    cap = max(1, min(target, B // 2)) if B >= 2 else 1
    for bt in range(cap, 0, -1):
        if B % bt == 0:
            return bt
    return 1


def _vmem_limit_bytes():
    """Generation-aware VMEM budget: ~3/4 of physical (48 MiB-class on v7x, ~96 MiB on v5e/v6e)."""
    try:
        cap = pltpu.get_tpu_info().vmem_capacity_bytes
    except Exception:
        cap = 64 * 1024 * 1024
    return max(32 * 1024 * 1024, min(int(cap * 3 // 4), 100 * 1024 * 1024))


def _make_in_specs(Bt, C_in, C_out, S, Sd, single_buffer):
    """x gets the normal double-buffered pipeline; grid-invariant operands are single-buffered."""
    def inv(shape):
        idx = lambda g: (0,) * len(shape)
        if single_buffer:
            try:
                return pl.BlockSpec(shape, idx, pipeline_mode=pl.Buffered(1))
            except (AttributeError, TypeError):
                pass
        return pl.BlockSpec(shape, idx)

    return [
        pl.BlockSpec((Bt, C_in, S), lambda g: (g, 0, 0)),   # x   (per batch-block)
        inv((Sd, S)),                                       # P^T (grid-invariant)
        inv((C_in, C_out)),                                 # w1^T
        inv((1, C_out)),                                    # b1
        inv((C_out, C_out)),                                # w2^T
        inv((1, C_out)),                                    # b2
    ]


# ---------------------------------------------- wrapper ----------------------------------------------
def fpn_head_forward(x, params, *, bt_target=8):
    """x: (B, C_in, H, W) NCHW float32.  Returns {'feat_res4', 'feat_res5'} with keepdim."""
    B, C_in, H, W = x.shape
    C_out = params["ds_conv_w"].shape[0]
    S = H * W
    Ho, Wo = (H + 1) // 2, (W + 1) // 2
    Sd = Ho * Wo

    Bt = _pick_bt(B, bt_target)
    G = B // Bt

    xf = x.reshape(B, C_in, S)  # contiguous -> free; the ONLY read of x

    # One-hot stride-2 (VALID) selection matrix, transposed: pt[t, s] = 1 iff s == 2i*W + 2j.
    src = ((jnp.arange(Ho) * 2)[:, None] * W + (jnp.arange(Wo) * 2)[None, :]).reshape(-1)
    pt = (src[:, None] == jnp.arange(S)[None, :]).astype(jnp.bfloat16)           # (Sd, S)

    # Fold eval-mode BatchNorm into the conv weights/bias; transpose for channels-last matmuls;
    # bf16 weights (MXU native), f32 biases / accumulation.
    s1 = params["ds_bn_gamma"] / jnp.sqrt(params["ds_bn_var"] + BN_EPS)
    w1t = (params["ds_conv_w"][:, :, 0, 0] * s1[:, None]).T.astype(jnp.bfloat16)  # (C_in, C_out)
    b1 = (params["ds_bn_beta"] - params["ds_bn_mean"] * s1).reshape(1, C_out).astype(jnp.float32)
    s2 = params["l4_bn_gamma"] / jnp.sqrt(params["l4_bn_var"] + BN_EPS)
    w2t = (params["l4_conv_w"][:, :, 0, 0] * s2[:, None]).T.astype(jnp.bfloat16)  # (C_out, C_out)
    b2 = (params["l4_bn_beta"] - params["l4_bn_mean"] * s2).reshape(1, C_out).astype(jnp.float32)

    out_shape = (
        jax.ShapeDtypeStruct((G, Bt, C_in), jnp.float32),
        jax.ShapeDtypeStruct((G, Bt, C_out), jnp.float32),
    )
    out_specs = [
        pl.BlockSpec((None, Bt, C_in), lambda g: (g, 0, 0)),    # feat_res4, lane-dense
        pl.BlockSpec((None, Bt, C_out), lambda g: (g, 0, 0)),   # feat_res5, lane-dense
    ]
    compiler_params = pltpu.CompilerParams(
        dimension_semantics=("parallel",),        # batch blocks are independent (dual-TC v7x)
        vmem_limit_bytes=_vmem_limit_bytes(),
    )

    def run(single_buffer):
        return pl.pallas_call(
            _fpn_head_kernel,
            out_shape=out_shape,
            grid=(G,),
            in_specs=_make_in_specs(Bt, C_in, C_out, S, Sd, single_buffer),
            out_specs=out_specs,
            compiler_params=compiler_params,
        )(xf, pt, w1t, b1, w2t, b2)

    try:
        r4, r5 = run(single_buffer=True)
    except Exception:
        # Fallback: default double-buffering of the grid-invariant operands.
        r4, r5 = run(single_buffer=False)

    return {
        "feat_res4": r4.reshape(B, C_in, 1, 1),
        "feat_res5": r5.reshape(B, C_out, 1, 1),
    }


# ------------------------------------ pure-JAX reference (f32) ------------------------------------
def _reference(x, params):
    s1 = params["ds_bn_gamma"] / jnp.sqrt(params["ds_bn_var"] + BN_EPS)
    c1 = params["ds_bn_beta"] - params["ds_bn_mean"] * s1
    d = jax.lax.conv_general_dilated(
        x, params["ds_conv_w"], window_strides=(2, 2), padding="VALID",
        dimension_numbers=("NCHW", "OIHW", "NCHW"))
    d = d * s1[None, :, None, None] + c1[None, :, None, None]

    s2 = params["l4_bn_gamma"] / jnp.sqrt(params["l4_bn_var"] + BN_EPS)
    c2 = params["l4_bn_beta"] - params["l4_bn_mean"] * s2
    a = jnp.maximum(d, 0.0)
    h = jax.lax.conv_general_dilated(
        a, params["l4_conv_w"], window_strides=(1, 1), padding="VALID",
        dimension_numbers=("NCHW", "OIHW", "NCHW"))
    h = h * s2[None, :, None, None] + c2[None, :, None, None]
    feat = jnp.maximum(d + h, 0.0)

    return {
        "feat_res4": jnp.max(x, axis=(2, 3), keepdims=True),
        "feat_res5": jnp.max(feat, axis=(2, 3), keepdims=True),
    }


if __name__ == "__main__":
    # Small stand-in shapes (real fpnHead: C_in=512/1024, C_out=1024/2048, RoI maps ~14x14).
    B, C_in, C_out, H, W = 4, 16, 32, 16, 16

    key = jax.random.PRNGKey(0)
    ks = jax.random.split(key, 11)
    x = jax.random.normal(ks[0], (B, C_in, H, W), jnp.float32)

    params = {
        "ds_conv_w": 0.1 * jax.random.normal(ks[1], (C_out, C_in, 1, 1), jnp.float32),
        "ds_bn_gamma": 1.0 + 0.1 * jax.random.normal(ks[2], (C_out,), jnp.float32),
        "ds_bn_beta": 0.1 * jax.random.normal(ks[3], (C_out,), jnp.float32),
        "ds_bn_mean": 0.1 * jax.random.normal(ks[4], (C_out,), jnp.float32),
        "ds_bn_var": 1.0 + 0.1 * jax.random.uniform(ks[5], (C_out,), jnp.float32),
        "l4_conv_w": 0.1 * jax.random.normal(ks[6], (C_out, C_out, 1, 1), jnp.float32),
        "l4_bn_gamma": 1.0 + 0.1 * jax.random.normal(ks[7], (C_out,), jnp.float32),
        "l4_bn_beta": 0.1 * jax.random.normal(ks[8], (C_out,), jnp.float32),
        "l4_bn_mean": 0.1 * jax.random.normal(ks[9], (C_out,), jnp.float32),
        "l4_bn_var": 1.0 + 0.1 * jax.random.uniform(ks[10], (C_out,), jnp.float32),
    }

    out = jax.block_until_ready(fpn_head_forward(x, params))
    ref = _reference(x, params)

    assert out["feat_res4"].shape == (B, C_in, 1, 1)
    assert out["feat_res5"].shape == (B, C_out, 1, 1)

    # feat_res4 is pure f32 max -> exact; feat_res5 uses bf16 conv operands -> loose tolerance.
    tol = {"feat_res4": (1e-5, 1e-5), "feat_res5": (3e-2, 3e-2)}
    for k in ("feat_res4", "feat_res5"):
        rtol, atol = tol[k]
        err = float(jnp.max(jnp.abs(out[k] - ref[k])))
        assert jnp.allclose(out[k], ref[k], rtol=rtol, atol=atol), f"{k} max abs err {err}"
    print("KERNEL_OK")
</pallas_src>

<mosaic_0001>
module attributes {stable_mosaic.version = 11 : i64} {
  func.func @_fpn_head_kernel(%arg0: i32, %arg1: memref<2x16x256xf32, #tpu.memory_space<vmem>>, %arg2: memref<64x256xbf16, #tpu.memory_space<vmem>>, %arg3: memref<16x32xbf16, #tpu.memory_space<vmem>>, %arg4: memref<1x32xf32, #tpu.memory_space<vmem>>, %arg5: memref<32x32xbf16, #tpu.memory_space<vmem>>, %arg6: memref<1x32xf32, #tpu.memory_space<vmem>>, %arg7: memref<1x2x16xf32, #tpu.memory_space<vmem>>, %arg8: memref<1x2x32xf32, #tpu.memory_space<vmem>>) attributes {dimension_semantics = [#tpu.dimension_semantics<parallel>], iteration_bounds = array<i64: 2>, scalar_prefetch = 0 : i64, scratch_operands = 0 : i64, tpu.core_type = #tpu.core_type<tc>, window_params = [{transform_indices = @transform_0, window_bounds = array<i64: 2, 16, 256>}, {pipeline_mode = #tpu.pipeline_mode<synchronous>, transform_indices = @transform_1, window_bounds = array<i64: 64, 256>}, {pipeline_mode = #tpu.pipeline_mode<synchronous>, transform_indices = @transform_2, window_bounds = array<i64: 16, 32>}, {pipeline_mode = #tpu.pipeline_mode<synchronous>, transform_indices = @transform_3, window_bounds = array<i64: 1, 32>}, {pipeline_mode = #tpu.pipeline_mode<synchronous>, transform_indices = @transform_4, window_bounds = array<i64: 32, 32>}, {pipeline_mode = #tpu.pipeline_mode<synchronous>, transform_indices = @transform_5, window_bounds = array<i64: 1, 32>}, {transform_indices = @transform_6, window_bounds = array<i64: 1, 2, 16>}, {transform_indices = @transform_7, window_bounds = array<i64: 1, 2, 32>}]} {
    %c0 = arith.constant 0 : index
    %c0_0 = arith.constant 0 : index
    %c0_1 = arith.constant 0 : index
    %0 = vector.load %arg1[%c0, %c0_0, %c0_1] : memref<2x16x256xf32, #tpu.memory_space<vmem>>, vector<2x16x256xf32>
    %cst = arith.constant dense<0xFF800000> : vector<2x16xf32>
    %1 = vector.multi_reduction <maximumf>, %0, %cst [2] : vector<2x16x256xf32> to vector<2x16xf32>
    %c0_2 = arith.constant 0 : index
    %c0_3 = arith.constant 0 : index
    %c0_4 = arith.constant 0 : index
    %2 = vector.load %arg7[%c0_2, %c0_3, %c0_4] : memref<1x2x16xf32, #tpu.memory_space<vmem>>, vector<1x2x16xf32>
    %3 = vector.shape_cast %2 : vector<1x2x16xf32> to vector<2x16xf32>
    %4 = vector.shape_cast %1 : vector<2x16xf32> to vector<1x2x16xf32>
    tpu.vector_store %arg7[%c0_2, %c0_3, %c0_4], %4 {strides = array<i32>} : memref<1x2x16xf32, #tpu.memory_space<vmem>>, vector<1x2x16xf32>,
    %c0_5 = arith.constant 0 : index
    %c0_6 = arith.constant 0 : index
    %5 = vector.load %arg2[%c0_5, %c0_6] : memref<64x256xbf16, #tpu.memory_space<vmem>>, vector<64x256xbf16>
    %6 = arith.truncf %0 : vector<2x16x256xf32> to vector<2x16x256xbf16>
    %7 = vector.extract_strided_slice %6 {offsets = [0, 0, 0], sizes = [1, 16, 256], strides = [1, 1, 1]} : vector<2x16x256xbf16> to vector<1x16x256xbf16>
    %8 = vector.shape_cast %7 : vector<1x16x256xbf16> to vector<16x256xbf16>
    %cst_7 = arith.constant dense<0.000000e+00> : vector<64x16xf32>
    %9 = tpu.matmul %5, %8, %cst_7 {dimension_numbers = #tpu.dot_dimension_numbers<[1], [1], [0], [0], [0, 0, 1, 0], [], []>} : vector<64x256xbf16>, vector<16x256xbf16>, vector<64x16xf32> -> vector<64x16xf32>
    %10 = vector.extract_strided_slice %6 {offsets = [1, 0, 0], sizes = [1, 16, 256], strides = [1, 1, 1]} : vector<2x16x256xbf16> to vector<1x16x256xbf16>
    %11 = vector.shape_cast %10 : vector<1x16x256xbf16> to vector<16x256xbf16>
    %cst_8 = arith.constant dense<0.000000e+00> : vector<64x16xf32>
    %12 = tpu.matmul %5, %11, %cst_8 {dimension_numbers = #tpu.dot_dimension_numbers<[1], [1], [0], [0], [0, 0, 1, 0], [], []>} : vector<64x256xbf16>, vector<16x256xbf16>, vector<64x16xf32> -> vector<64x16xf32>
    %13 = tpu.concatenate %9, %12 in 0 : vector<64x16xf32>, vector<64x16xf32> -> vector<128x16xf32>
    %14 = arith.truncf %13 : vector<128x16xf32> to vector<128x16xbf16>
    %c0_9 = arith.constant 0 : index
    %c0_10 = arith.constant 0 : index
    %15 = vector.load %arg3[%c0_9, %c0_10] : memref<16x32xbf16, #tpu.memory_space<vmem>>, vector<16x32xbf16>
    %cst_11 = arith.constant dense<0.000000e+00> : vector<128x32xf32>
    %16 = tpu.matmul %14, %15, %cst_11 {dimension_numbers = #tpu.dot_dimension_numbers<[1], [0], [0], [1], [0, 0, 1, 1], [], []>} : vector<128x16xbf16>, vector<16x32xbf16>, vector<128x32xf32> -> vector<128x32xf32>
    %c0_12 = arith.constant 0 : index
    %c0_13 = arith.constant 0 : index
    %17 = vector.load %arg4[%c0_12, %c0_13] : memref<1x32xf32, #tpu.memory_space<vmem>>, vector<1x32xf32>
    %18 = vector.broadcast %17 : vector<1x32xf32> to vector<128x32xf32>
    %19 = arith.addf %16, %18 : vector<128x32xf32>
    %cst_14 = arith.constant 0.000000e+00 : f32
    %20 = vector.broadcast %cst_14 : f32 to vector<128x32xf32>
    %21 = arith.maximumf %19, %20 : vector<128x32xf32>
    %22 = arith.truncf %21 : vector<128x32xf32> to vector<128x32xbf16>
    %c0_15 = arith.constant 0 : index
    %c0_16 = arith.constant 0 : index
    %23 = vector.load %arg5[%c0_15, %c0_16] : memref<32x32xbf16, #tpu.memory_space<vmem>>, vector<32x32xbf16>
    %cst_17 = arith.constant dense<0.000000e+00> : vector<128x32xf32>
    %24 = tpu.matmul %22, %23, %cst_17 {dimension_numbers = #tpu.dot_dimension_numbers<[1], [0], [0], [1], [0, 0, 1, 1], [], []>} : vector<128x32xbf16>, vector<32x32xbf16>, vector<128x32xf32> -> vector<128x32xf32>
    %c0_18 = arith.constant 0 : index
    %c0_19 = arith.constant 0 : index
    %25 = vector.load %arg6[%c0_18, %c0_19] : memref<1x32xf32, #tpu.memory_space<vmem>>, vector<1x32xf32>
    %26 = vector.broadcast %25 : vector<1x32xf32> to vector<128x32xf32>
    %27 = arith.addf %24, %26 : vector<128x32xf32>
    %28 = arith.addf %19, %27 : vector<128x32xf32>
    %cst_20 = arith.constant 0.000000e+00 : f32
    %29 = vector.broadcast %cst_20 : f32 to vector<128x32xf32>
    %30 = arith.maximumf %28, %29 : vector<128x32xf32>
    %31 = vector.shape_cast %30 : vector<128x32xf32> to vector<2x64x32xf32>
    %cst_21 = arith.constant dense<0xFF800000> : vector<2x32xf32>
    %32 = vector.multi_reduction <maximumf>, %31, %cst_21 [1] : vector<2x64x32xf32> to vector<2x32xf32>
    %c0_22 = arith.constant 0 : index
    %c0_23 = arith.constant 0 : index
    %c0_24 = arith.constant 0 : index
    %33 = vector.load %arg8[%c0_22, %c0_23, %c0_24] : memref<1x2x32xf32, #tpu.memory_space<vmem>>, vector<1x2x32xf32>
    %34 = vector.shape_cast %33 : vector<1x2x32xf32> to vector<2x32xf32>
    %35 = vector.shape_cast %32 : vector<2x32xf32> to vector<1x2x32xf32>
    tpu.vector_store %arg8[%c0_22, %c0_23, %c0_24], %35 {strides = array<i32>} : memref<1x2x32xf32, #tpu.memory_space<vmem>>, vector<1x2x32xf32>,
    return
  }
  func.func @transform_0(%arg0: i32) -> (i32, i32, i32) {
    %c0_i32 = arith.constant 0 : i32
    %c0_i32_0 = arith.constant 0 : i32
    %c0_i32_1 = arith.constant 0 : i32
    return %arg0, %c0_i32, %c0_i32_0 : i32, i32, i32
  }
  func.func @transform_1(%arg0: i32) -> (i32, i32) {
    %c0_i32 = arith.constant 0 : i32
    %c0_i32_0 = arith.constant 0 : i32
    %c0_i32_1 = arith.constant 0 : i32
    return %c0_i32, %c0_i32_0 : i32, i32
  }
  func.func @transform_2(%arg0: i32) -> (i32, i32) {
    %c0_i32 = arith.constant 0 : i32
    %c0_i32_0 = arith.constant 0 : i32
    %c0_i32_1 = arith.constant 0 : i32
    return %c0_i32, %c0_i32_0 : i32, i32
  }
  func.func @transform_3(%arg0: i32) -> (i32, i32) {
    %c0_i32 = arith.constant 0 : i32
    %c0_i32_0 = arith.constant 0 : i32
    %c0_i32_1 = arith.constant 0 : i32
    return %c0_i32, %c0_i32_0 : i32, i32
  }
  func.func @transform_4(%arg0: i32) -> (i32, i32) {
    %c0_i32 = arith.constant 0 : i32
    %c0_i32_0 = arith.constant 0 : i32
    %c0_i32_1 = arith.constant 0 : i32
    return %c0_i32, %c0_i32_0 : i32, i32
  }
  func.func @transform_5(%arg0: i32) -> (i32, i32) {
    %c0_i32 = arith.constant 0 : i32
    %c0_i32_0 = arith.constant 0 : i32
    %c0_i32_1 = arith.constant 0 : i32
    return %c0_i32, %c0_i32_0 : i32, i32
  }
  func.func @transform_6(%arg0: i32) -> (i32, i32, i32) {
    %c0_i32 = arith.constant 0 : i32
    %c0_i32_0 = arith.constant 0 : i32
    %c0_i32_1 = arith.constant 0 : i32
    return %arg0, %c0_i32, %c0_i32_0 : i32, i32, i32
  }
  func.func @transform_7(%arg0: i32) -> (i32, i32, i32) {
    %c0_i32 = arith.constant 0 : i32
    %c0_i32_0 = arith.constant 0 : i32
    %c0_i32_1 = arith.constant 0 : i32
    return %arg0, %c0_i32, %c0_i32_0 : i32, i32, i32
  }
}

module attributes {stable_mosaic.version = 11 : i64} {
  func.func @_fpn_head_kernel(%arg0: i32, %arg1: memref<2x16x256xf32, #tpu.memory_space<vmem>>, %arg2: memref<64x256xbf16, #tpu.memory_space<vmem>>, %arg3: memref<16x32xbf16, #tpu.memory_space<vmem>>, %arg4: memref<1x32xf32, #tpu.memory_space<vmem>>, %arg5: memref<32x32xbf16, #tpu.memory_space<vmem>>, %arg6: memref<1x32xf32, #tpu.memory_space<vmem>>, %arg7: memref<1x2x16xf32, #tpu.memory_space<vmem>>, %arg8: memref<1x2x32xf32, #tpu.memory_space<vmem>>) attributes {dimension_semantics = [#tpu.dimension_semantics<parallel>], iteration_bounds = array<i64: 2>, scalar_prefetch = 0 : i64, scratch_operands = 0 : i64, tpu.core_type = #tpu.core_type<tc>, window_params = [{transform_indices = @transform_0, window_bounds = array<i64: 2, 16, 256>}, {pipeline_mode = #tpu.pipeline_mode<synchronous>, transform_indices = @transform_1, window_bounds = array<i64: 64, 256>}, {pipeline_mode = #tpu.pipeline_mode<synchronous>, transform_indices = @transform_2, window_bounds = array<i64: 16, 32>}, {pipeline_mode = #tpu.pipeline_mode<synchronous>, transform_indices = @transform_3, window_bounds = array<i64: 1, 32>}, {pipeline_mode = #tpu.pipeline_mode<synchronous>, transform_indices = @transform_4, window_bounds = array<i64: 32, 32>}, {pipeline_mode = #tpu.pipeline_mode<synchronous>, transform_indices = @transform_5, window_bounds = array<i64: 1, 32>}, {transform_indices = @transform_6, window_bounds = array<i64: 1, 2, 16>}, {transform_indices = @transform_7, window_bounds = array<i64: 1, 2, 32>}]} {
    %c0 = arith.constant 0 : index
    %c0_0 = arith.constant 0 : index
    %c0_1 = arith.constant 0 : index
    %0 = vector.load %arg1[%c0, %c0_0, %c0_1] : memref<2x16x256xf32, #tpu.memory_space<vmem>>, vector<2x16x256xf32>
    %cst = arith.constant dense<0xFF800000> : vector<2x16xf32>
    %1 = vector.multi_reduction <maximumf>, %0, %cst [2] : vector<2x16x256xf32> to vector<2x16xf32>
    %c0_2 = arith.constant 0 : index
    %c0_3 = arith.constant 0 : index
    %c0_4 = arith.constant 0 : index
    %2 = vector.load %arg7[%c0_2, %c0_3, %c0_4] : memref<1x2x16xf32, #tpu.memory_space<vmem>>, vector<1x2x16xf32>
    %3 = vector.shape_cast %2 : vector<1x2x16xf32> to vector<2x16xf32>
    %4 = vector.shape_cast %1 : vector<2x16xf32> to vector<1x2x16xf32>
    tpu.vector_store %arg7[%c0_2, %c0_3, %c0_4], %4 {strides = array<i32>} : memref<1x2x16xf32, #tpu.memory_space<vmem>>, vector<1x2x16xf32>,
    %c0_5 = arith.constant 0 : index
    %c0_6 = arith.constant 0 : index
    %5 = vector.load %arg2[%c0_5, %c0_6] : memref<64x256xbf16, #tpu.memory_space<vmem>>, vector<64x256xbf16>
    %6 = arith.truncf %0 : vector<2x16x256xf32> to vector<2x16x256xbf16>
    %7 = vector.extract_strided_slice %6 {offsets = [0, 0, 0], sizes = [1, 16, 256], strides = [1, 1, 1]} : vector<2x16x256xbf16> to vector<1x16x256xbf16>
    %8 = vector.shape_cast %7 : vector<1x16x256xbf16> to vector<16x256xbf16>
    %cst_7 = arith.constant dense<0.000000e+00> : vector<64x16xf32>
    %9 = tpu.matmul %5, %8, %cst_7 {dimension_numbers = #tpu.dot_dimension_numbers<[1], [1], [0], [0], [0, 0, 1, 0], [], []>} : vector<64x256xbf16>, vector<16x256xbf16>, vector<64x16xf32> -> vector<64x16xf32>
    %10 = vector.extract_strided_slice %6 {offsets = [1, 0, 0], sizes = [1, 16, 256], strides = [1, 1, 1]} : vector<2x16x256xbf16> to vector<1x16x256xbf16>
    %11 = vector.shape_cast %10 : vector<1x16x256xbf16> to vector<16x256xbf16>
    %cst_8 = arith.constant dense<0.000000e+00> : vector<64x16xf32>
    %12 = tpu.matmul %5, %11, %cst_8 {dimension_numbers = #tpu.dot_dimension_numbers<[1], [1], [0], [0], [0, 0, 1, 0], [], []>} : vector<64x256xbf16>, vector<16x256xbf16>, vector<64x16xf32> -> vector<64x16xf32>
    %13 = tpu.concatenate %9, %12 in 0 : vector<64x16xf32>, vector<64x16xf32> -> vector<128x16xf32>
    %14 = arith.truncf %13 : vector<128x16xf32> to vector<128x16xbf16>
    %c0_9 = arith.constant 0 : index
    %c0_10 = arith.constant 0 : index
    %15 = vector.load %arg3[%c0_9, %c0_10] : memref<16x32xbf16, #tpu.memory_space<vmem>>, vector<16x32xbf16>
    %cst_11 = arith.constant dense<0.000000e+00> : vector<128x32xf32>
    %16 = tpu.matmul %14, %15, %cst_11 {dimension_numbers = #tpu.dot_dimension_numbers<[1], [0], [0], [1], [0, 0, 1, 1], [], []>} : vector<128x16xbf16>, vector<16x32xbf16>, vector<128x32xf32> -> vector<128x32xf32>
    %c0_12 = arith.constant 0 : index
    %c0_13 = arith.constant 0 : index
    %17 = vector.load %arg4[%c0_12, %c0_13] : memref<1x32xf32, #tpu.memory_space<vmem>>, vector<1x32xf32>
    %18 = vector.broadcast %17 : vector<1x32xf32> to vector<128x32xf32>
    %19 = arith.addf %16, %18 : vector<128x32xf32>
    %cst_14 = arith.constant 0.000000e+00 : f32
    %20 = vector.broadcast %cst_14 : f32 to vector<128x32xf32>
    %21 = arith.maximumf %19, %20 : vector<128x32xf32>
    %22 = arith.truncf %21 : vector<128x32xf32> to vector<128x32xbf16>
    %c0_15 = arith.constant 0 : index
    %c0_16 = arith.constant 0 : index
    %23 = vector.load %arg5[%c0_15, %c0_16] : memref<32x32xbf16, #tpu.memory_space<vmem>>, vector<32x32xbf16>
    %cst_17 = arith.constant dense<0.000000e+00> : vector<128x32xf32>
    %24 = tpu.matmul %22, %23, %cst_17 {dimension_numbers = #tpu.dot_dimension_numbers<[1], [0], [0], [1], [0, 0, 1, 1], [], []>} : vector<128x32xbf16>, vector<32x32xbf16>, vector<128x32xf32> -> vector<128x32xf32>
    %c0_18 = arith.constant 0 : index
    %c0_19 = arith.constant 0 : index
    %25 = vector.load %arg6[%c0_18, %c0_19] : memref<1x32xf32, #tpu.memory_space<vmem>>, vector<1x32xf32>
    %26 = vector.broadcast %25 : vector<1x32xf32> to vector<128x32xf32>
    %27 = arith.addf %24, %26 : vector<128x32xf32>
    %28 = arith.addf %19, %27 : vector<128x32xf32>
    %cst_20 = arith.constant 0.000000e+00 : f32
    %29 = vector.broadcast %cst_20 : f32 to vector<128x32xf32>
    %30 = arith.maximumf %28, %29 : vector<128x32xf32>
    %31 = vector.shape_cast %30 : vector<128x32xf32> to vector<2x64x32xf32>
    %cst_21 = arith.constant dense<0xFF800000> : vector<2x32xf32>
    %32 = vector.multi_reduction <maximumf>, %31, %cst_21 [1] : vector<2x64x32xf32> to vector<2x32xf32>
    %c0_22 = arith.constant 0 : index
    %c0_23 = arith.constant 0 : index
    %c0_24 = arith.constant 0 : index
    %33 = vector.load %arg8[%c0_22, %c0_23, %c0_24] : memref<1x2x32xf32, #tpu.memory_space<vmem>>, vector<1x2x32xf32>
    %34 = vector.shape_cast %33 : vector<1x2x32xf32> to vector<2x32xf32>
    %35 = vector.shape_cast %32 : vector<2x32xf32> to vector<1x2x32xf32>
    tpu.vector_store %arg8[%c0_22, %c0_23, %c0_24], %35 {strides = array<i32>} : memref<1x2x32xf32, #tpu.memory_space<vmem>>, vector<1x2x32xf32>,
    return
  }
  func.func @transform_0(%arg0: i32) -> (i32, i32, i32) {
    %c0_i32 = arith.constant 0 : i32
    %c0_i32_0 = arith.constant 0 : i32
    %c0_i32_1 = arith.constant 0 : i32
    return %arg0, %c0_i32, %c0_i32_0 : i32, i32, i32
  }
  func.func @transform_1(%arg0: i32) -> (i32, i32) {
    %c0_i32 = arith.constant 0 : i32
    %c0_i32_0 = arith.constant 0 : i32
    %c0_i32_1 = arith.constant 0 : i32
    return %c0_i32, %c0_i32_0 : i32, i32
  }
  func.func @transform_2(%arg0: i32) -> (i32, i32) {
    %c0_i32 = arith.constant 0 : i32
    %c0_i32_0 = arith.constant 0 : i32
    %c0_i32_1 = arith.constant 0 : i32
    return %c0_i32, %c0_i32_0 : i32, i32
  }
  func.func @transform_3(%arg0: i32) -> (i32, i32) {
    %c0_i32 = arith.constant 0 : i32
    %c0_i32_0 = arith.constant 0 : i32
    %c0_i32_1 = arith.constant 0 : i32
    return %c0_i32, %c0_i32_0 : i32, i32
  }
  func.func @transform_4(%arg0: i32) -> (i32, i32) {
    %c0_i32 = arith.constant 0 : i32
    %c0_i32_0 = arith.constant 0 : i32
    %c0_i32_1 = arith.constant 0 : i32
    return %c0_i32, %c0_i32_0 : i32, i32
  }
  func.func @transform_5(%arg0: i32) -> (i32, i32) {
    %c0_i32 = arith.constant 0 : i32
    %c0_i32_0 = arith.constant 0 : i32
    %c0_i32_1 = arith.constant 0 : i32
    return %c0_i32, %c0_i32_0 : i32, i32
  }
  func.func @transform_6(%arg0: i32) -> (i32, i32, i32) {
    %c0_i32 = arith.constant 0 : i32
    %c0_i32_0 = arith.constant 0 : i32
    %c0_i32_1 = arith.constant 0 : i32
    return %arg0, %c0_i32, %c0_i32_0 : i32, i32, i32
  }
  func.func @transform_7(%arg0: i32) -> (i32, i32, i32) {
    %c0_i32 = arith.constant 0 : i32
    %c0_i32_0 = arith.constant 0 : i32
    %c0_i32_1 = arith.constant 0 : i32
    return %arg0, %c0_i32, %c0_i32_0 : i32, i32, i32
  }
}

</mosaic_0001>

<bundles_post_ra>
// kernel: tpu_custom_call.1
= control target key start
LH: loop header
LB: loop body
LE: loop exit
PB: predicated region body
PF: predicated region fallthrough
CT: control target
= control target key end

     0   :  { %s2073_s0 = inlined_call_operand.hbm [shape: f32[4,16,256], index: 0, kind: input, shape index: {}]   ;;  %s2074_s1 = inlined_call_operand.hbm [shape: bf16[64,256], index: 1, kind: input, shape index: {}]   ;;  %s2075_s2 = inlined_call_operand.hbm [shape: bf16[16,32], index: 2, kind: input, shape index: {}]   ;;  %s2076_s3 = inlined_call_operand.vmem [shape: f32[1,32], index: 3, kind: input, shape index: {}]   ;;  %s2077_s4 = inlined_call_operand.hbm [shape: bf16[32,32], index: 4, kind: input, shape index: {}]   ;;  %s2078_s5 = inlined_call_operand.vmem [shape: f32[1,32], index: 5, kind: input, shape index: {}]   ;;  %s2079_s6 = inlined_call_operand.hbm [shape: f32[2,2,16], index: 6, kind: output, shape index: {0}]   ;;  %s2080_s7 = inlined_call_operand.hbm [shape: f32[2,2,32], index: 7, kind: output, shape index: {1}]  }
   0x1   :  { %2085 = sst [smem:[#allocation19_spill]] %s2074_s1 }
   0x2   :  { %13 = vsyncpa [#allocation3], 0 }
   0x3   :  { %15 = vsyncpa [#allocation3 + $0x1], 0 }
   0x4   :  { %16 = vsyncpa [#allocation6], 0 }
   0x5   :  { %17 = vsyncpa [#allocation9], 0 }
   0x6   :  { %18 = vsyncpa [#allocation4], 0 }
   0x7   :  { %20 = vsyncpa [#allocation4 + $0x1], 0 }
   0x8   :  { %21 = vsyncpa [#allocation12], 0 }
   0x9   :  { %23 = vsyncpa [#allocation12 + $0x1], 0  ;;  %s1633_s24 = smov 0   ;;  %s1635_s25 = smov 0  }
   0xa   :  { %s1637_s26 = smov 0   ;;  %s1639_s27 = smov 0  }
   0xb LB: > { %s1654_s28 = sadd.s32 4294967295, %s1579_s27   ;;  %s1145_s29 = sadd.s32 4294967294, %s1579_s27   ;;  %s1579_s27 = sphi %s1639_s27, %s2108_s27   ;;  %s1575_s26 = sphi %s1637_s26, %s2107_s26   ;;  %s1571_s25 = sphi %s1635_s25, %s2106_s25   ;;  %s1567_s24 = sphi %s1633_s24, %s2105_s24  }
   0xc   : > { %p49_p0 = scmp.ne.s32.totalorder %s1571_s25, %s1567_s24  ;;  %p2081_p1 = scmp.eq.s32.totalorder %s1654_s28, 0 }
   0xd   : > { %p184_p3 = scmp.eq.s32.totalorder %s1145_s29, 1  ;;  %p1146_p5 = scmp.ge.s32.totalorder %s1579_s27, 1 }
   0xe   : > { %p1663_p4 = por %p2081_p1, %p49_p0  ;;  %p217_p7 = scmp.lt.s32.totalorder %s1579_s27, 3 }
   0xf   : > { %p1668_p6 = por %p184_p3, %p49_p0  ;;  %s1581_s10 = smov [#allocation5]  }
  0x10   : > { %s2086_s30 = scalar_select %p1663_p4, 1, 0 }
  0x11   : > { %s2087_s8 = scalar_select %p1668_p6, 1, 0 }
  0x12   : > { %p1673_p8 = pnand %p1146_p5, %p217_p7  ;;  %s229_s11 = sshll.u32 %s1581_s10, 4  ;;  %s1677_s11 = int_to_ptr.vmem [resolvable:$true] %s229_s11 }
  0x13   : > { %2088 = sst [smem:[#allocation18_spill]] %s2087_s8  ;;  %s1582_s13 = smov [#allocation7]  }
  0x14   : > { %s2089_s9 = scalar_select %p1673_p8, 1, 0 }
  0x15   : > { %p1274_p9 = pneg %p1673_p8  ;;  %s242_s14 = sshll.u32 %s1582_s13, 4  ;;  %s1688_s14 = int_to_ptr.vmem [resolvable:$true] %s242_s14 }
  0x16   : > { %s2091_s1 = sld [smem:[#allocation19_spill]] }
  0x17   : > { %p1684_p11 = pnand %p1274_p9, %p2081_p1 }
  0x19   : > { %p1698_p13 = pneg %p1684_p11 }
  0x1c   : > { %s1359_s17 = scalar_lea.hbm %s2091_s1, 1024 }
  0x1d   : > { %p1360_p12 = scmp.ne.s32.totalorder %s2091_s1, %s1359_s17  ;;  %p1366_p5 = scmp.lt.u32.totalorder %s1359_s17, %s2091_s1 }
  0x1f   : > { %p1362_p0 = pnand %p1698_p13, %p1360_p12 }
  0x21   : > { %p1363_p3 = pneg %p1362_p0 }
  0x23   : > { %p1368_p7 = pnand %p1366_p5, %p1363_p3 }
  0x25   : > { %1371 = shalt.err (!%p1368_p7)
}
  0x26   : > { %s1372_s23 = scalar_lea.vmem %s1677_s11, 1024  ;;  %p1380_p2 = scmp.lt.s32.totalorder %s1677_s11, %s1677_s11 }
  0x27   : > { %p1373_p9 = scmp.ne.s32.totalorder %s1677_s11, %s1372_s23  ;;  %p1381_p6 = scmp.lt.s32.totalorder %s1372_s23, %s1372_s23 }
  0x29   : > { %p1375_p10 = pnand %p1373_p9, %p1698_p13  ;;  %p1382_p12 = por %p1381_p6, %p1380_p2 }
  0x2b   : > { %p1376_p1 = pneg %p1375_p10 }
  0x2d   : > { %p1383_p0 = pnand %p1382_p12, %p1376_p1 }
  0x2f   : > { %1386 = shalt.err (!%p1383_p0)
}
  0x30   : > { %s1583_s29 = smov 128   ;;  %s1584_s10 = smov 8  }
  0x31   : > { %1277 = dma.hbm_to_vmem [thread:$0]  (!%p1684_p11), %s2091_s1, 1024, %s1677_s11, [#allocation6], %s1583_s29, %s1583_s29, %s1584_s10  }
  0x32   : > { %s1387_s18 = scalar_lea.hbm %s2075_s2, 128 }
  0x33   : > { %p1388_p2 = scmp.ne.s32.totalorder %s2075_s2, %s1387_s18  ;;  %p1394_p10 = scmp.lt.u32.totalorder %s1387_s18, %s2075_s2 }
  0x35   : > { %p1390_p1 = pnand %p1388_p2, %p1698_p13 }
  0x37   : > { %p1391_p6 = pneg %p1390_p1 }
  0x39   : > { %p1396_p3 = pnand %p1394_p10, %p1391_p6 }
  0x3b   : > { %1399 = shalt.err (!%p1396_p3)
}
  0x3c   : > { %s1400_s11 = scalar_lea.vmem %s1688_s14, 128  ;;  %p1408_p12 = scmp.lt.s32.totalorder %s1688_s14, %s1688_s14 }
  0x3d   : > { %p1401_p5 = scmp.ne.s32.totalorder %s1688_s14, %s1400_s11  ;;  %p1409_p0 = scmp.lt.s32.totalorder %s1400_s11, %s1400_s11 }
  0x3f   : > { %p1403_p7 = pnand %p1401_p5, %p1698_p13  ;;  %p1410_p2 = por %p1409_p0, %p1408_p12 }
  0x41   : > { %p1404_p9 = pneg %p1403_p7 }
  0x43   : > { %p1411_p1 = pnand %p1410_p2, %p1404_p9 }
  0x45   : > { %1414 = shalt.err (!%p1411_p1)
}
  0x46   : > { %s1585_s29 = smov 64   ;;  %s1586_s10 = smov 4  }
  0x47   : > { %1280 = dma.hbm_to_vmem [thread:$0]  (!%p1684_p11), %s2075_s2, 128, %s1688_s14, [#allocation6], %s1585_s29, %s1585_s29, %s1586_s10  }
  0x48   : > { %s1587_s16 = smov [#allocation8]   ;;  %s1743_s18 = sadd.s32 1, %s1579_s27  }
  0x49   : > { %s258_s17 = sshll.u32 %s1587_s16, 4  ;;  %s1415_s22 = scalar_lea.hbm %s2077_s4, 256  ;;  %s259_s17 = int_to_ptr.vmem [resolvable:$true] %s258_s17 }
  0x4a   : > { %p1416_p6 = scmp.ne.s32.totalorder %s2077_s4, %s1415_s22  ;;  %p1422_p5 = scmp.lt.u32.totalorder %s1415_s22, %s2077_s4 }
  0x4c   : > { %p1418_p10 = pnand %p1416_p6, %p1698_p13 }
  0x4e   : > { %p1419_p3 = pneg %p1418_p10 }
  0x50   : > { %p1424_p7 = pnand %p1422_p5, %p1419_p3 }
  0x52   : > { %1427 = shalt.err (!%p1424_p7)
}
  0x53   : > { %s1428_s14 = scalar_lea.vmem %s259_s17, 256  ;;  %p1436_p2 = scmp.lt.s32.totalorder %s259_s17, %s259_s17 }
  0x54   : > { %p1429_p9 = scmp.ne.s32.totalorder %s259_s17, %s1428_s14  ;;  %p1437_p1 = scmp.lt.s32.totalorder %s1428_s14, %s1428_s14 }
  0x56   : > { %p1431_p12 = pnand %p1429_p9, %p1698_p13  ;;  %p1438_p4 = por %p1437_p1, %p1436_p2 }
  0x58   : > { %p1432_p0 = pneg %p1431_p12 }
  0x5a   : > { %p1439_p8 = pnand %p1438_p4, %p1432_p0 }
  0x5c   : > { %1442 = shalt.err (!%p1439_p8)
}
  0x5d   : > { %1283 = dma.hbm_to_vmem [thread:$0]  (!%p1684_p11), %s2077_s4, 256, %s259_s17, [#allocation9], %s1585_s29, %s1585_s29, %s1586_s10  }
  0x5e   : > { %s33_s1 = ssub.s32 %s1579_s27, %s1743_s18  ;;  %s36_s8 = sadd.s32 1, %s1575_s26 }
  0x5f   : > { %p34_p4 = scmp.eq.s32.totalorder %s33_s1, 0  ;;  %p43_p8 = scmp.ne.s32.totalorder %s1575_s26, %s1571_s25 }
  0x60   : > { %p44_p13 = scmp.eq.s32.totalorder %s1579_s27, 0  ;;  %p1298_p6 = scmp.lt.s32.totalorder %s1579_s27, 2 }
  0x61   : > { %s1771_s12 = scalar_select %p34_p4, %s1575_s26, %s36_s8  }
  0x62   : > { %p45_p10 = por %p44_p13, %p43_p8  ;;  %p2093_p3 = scmp.eq.s32.totalorder %s1654_s28, 1 }
  0x63   : > { %s275_s16 = sand.u32 1, %s1575_s26   ;;  %s1198_s19 = sshll.u32 %s1579_s27, 10 }
  0x64   : > { %p1775_p5 = por %p2093_p3, %p43_p8  ;;  %s1151_s21 = sshll.u32 %s275_s16, 6 }
  0x65   : > { %s1784_s29 = scalar_lea.hbm %s2073_s0, %s1198_s19  ;;  %s279_s10 = scalar_lea.vmem [#allocation2], %s1151_s21 }
  0x66   : > { %s287_s17 = sshll.u32 %s279_s10, 4  ;;  %p1786_p11 = pnand %p1298_p6, %p45_p10  ;;  %s1790_s17 = int_to_ptr.vmem [resolvable:$true] %s287_s17 }
  0x67   : > { %s1792_s14 = scalar_lea.sflag [#allocation3], %s275_s16  ;;  %s1443_s13 = scalar_lea.hbm %s1784_s29, 1024 }
  0x68   : > { %p1444_p7 = scmp.ne.s32.totalorder %s1784_s29, %s1443_s13  ;;  %p1445_p9 = pneg %p1786_p11 }
  0x69   : > { %s1448_s8 = scalar_lea.hbm %s2073_s0, 2048  ;;  %p1449_p2 = scmp.lt.u32.totalorder %s1784_s29, %s2073_s0 }
  0x6a   : > { %p1446_p12 = pnand %p1445_p9, %p1444_p7  ;;  %p1450_p1 = scmp.lt.u32.totalorder %s1448_s8, %s1443_s13 }
  0x6b   : > { %p1452_p8 = scmp.lt.u32.totalorder %s1443_s13, %s1784_s29 }
  0x6c   : > { %p1447_p0 = pneg %p1446_p12  ;;  %p1451_p4 = por %p1450_p1, %p1449_p2 }
  0x6e   : > { %p1453_p13 = por %p1452_p8, %p1451_p4 }
  0x70   : > { %p1454_p6 = pnand %p1453_p13, %p1447_p0 }
  0x72   : > { %1457 = shalt.err (!%p1454_p6)
}
  0x73   : > { %s1458_s16 = scalar_lea.vmem %s1790_s17, 1024  ;;  %s1588_s22 = smov [#allocation2]  }
  0x74   : > { %p1459_p10 = scmp.ne.s32.totalorder %s1790_s17, %s1458_s16  ;;  %s1463_s23 = sshll.u32 %s1588_s22, 4  ;;  %s1464_s23 = int_to_ptr.vmem [resolvable:$false] %s1463_s23 }
  0x75   : > { %s1465_s10 = scalar_lea.vmem %s1464_s23, 2048  ;;  %p1466_p12 = scmp.lt.s32.totalorder %s1790_s17, %s1464_s23 }
  0x76   : > { %p1461_p3 = pnand %p1459_p10, %p1445_p9  ;;  %p1467_p2 = scmp.lt.s32.totalorder %s1465_s10, %s1458_s16 }
  0x78   : > { %p1462_p7 = pneg %p1461_p3  ;;  %p1468_p1 = por %p1467_p2, %p1466_p12 }
  0x7a   : > { %p1469_p4 = pnand %p1468_p1, %p1462_p7 }
  0x7c   : > { %1472 = shalt.err (!%p1469_p4)
}
  0x7d   : > { %s1589_s13 = smov 256   ;;  %s1590_s15 = smov 16  }
  0x7e   : > { %1287 = dma.hbm_to_vmem [thread:$0]  (!%p1786_p11), %s1784_s29, 1024, %s1790_s17, %s1792_s14, %s1589_s13, %s1589_s13, %s1590_s15  }
  0x7f   : > { %p2096_p9 = scmp.ne.s32.totalorder %s2089_s9, 0 }
  0x80   : > { %s1823_s1 = sand.u32 (!%p2096_p9), 1, %s1571_s25   ;;  %p2097_p0 = scmp.ne.s32.totalorder (!%p2096_p9), %s2086_s30, 0 }
  0x81   : > { %299 = sbr.rel (%p2096_p9) target bundleno = 887 (0x377), region = 44  ;;  %s1156_s8 = sshll.u32 (!%p2096_p9), %s1823_s1, 6 }
  0x82   : > { %s302_s19 = scalar_lea.sflag (!%p2096_p9), [#allocation3], %s1823_s1  ;;  %s305_s21 = scalar_lea.vmem (!%p2096_p9), [#allocation2], %s1156_s8 }
  0x88   : > { %1546 = dma.done.wait (%p2097_p0), %s302_s19, 1024  }
  0x89   : > { %1548 = vsyncadd (%p2097_p0), %s302_s19, 4294966272  ;;  %p2098_p8 = scmp.eq.s32.totalorder %s1654_s28, 0 }
  0x8b   : > { %1550 = dma.done.wait (%p2098_p8), [#allocation6], 1152   ;;  %p2099_p11 = pmov %p2098_p8 }
  0x8c   : > { %p2100_p13 = pmov %p2098_p8 }
  0x8d   : > { %1552 = vsyncadd (%p2099_p11), [#allocation6], 4294966144 }
  0x8e   : > { %1554 = dma.done.wait (%p2100_p13), [#allocation9], 256   ;;  %p2101_p6 = pmov %p2098_p8 }
  0x8f   : > { %v1839_v0 = vld [vmem:[%s305_s21 + $0x8] sm:$0xff]  ;;  %v1841_v1 = vld [vmem:[%s305_s21 + $0x18] sm:$0xff]  ;;  %v1843_v2 = vld [vmem:[%s305_s21] sm:$0xff]  ;;  %vm611_vm0 = vcmask 130048   ;;  %vm780_vm1 = vcmask 261120   ;;  %vm390_vm2 = vcmask 130112  }
  0x90   : > { %1556 = vsyncadd (%p2101_p6), [#allocation9], 4294967040  ;;  %v415_v3 = vpack.c.bf16 %v1841_v1, %v1839_v0  ;;  %v1847_v4 = vld [vmem:[%s305_s21 + $0x10] sm:$0xff]  ;;  %v1346_v6 = vld [vmem:[#allocation5 + $0x4] ss:$8 sps:$4 sm:$0xff]   ;;  %vm401_vm3 = vcmask 1041409  }
  0x91   : > { %v414_v5 = vpack.c.bf16 %v1847_v4, %v1843_v2  ;;  %v1851_v7 = vld [vmem:[%s305_s21 + $0x28] sm:$0xff]  ;;  %v1853_v8 = vld [vmem:[%s305_s21 + $0x38] sm:$0xff]  ;;  %v1855_v9 = vld [vmem:[%s305_s21 + $0x20] sm:$0xff]  ;;  %490 = vmatprep.mubr.bf16.mxu0 %v1346_v6  ;;  %555 = vmatprep.mubr.bf16.mxu1 %v1346_v6  ;;  %v366_v6 = vmax.f32 %v1847_v4, %v1841_v1  ;;  %s1160_s29 = sshll.u32 %s1823_s1, 1  ;;  %vm404_vm4 = vcmask 123904   ;;  %s1193_s11 = sshll.u32 %s1654_s28, 5 }
  0x92   : > { %458 = vmatprep.subr.bf16.mxu0 %v415_v3  ;;  %v1857_v10 = vld [vmem:[%s305_s21 + $0x30] sm:$0xff]  ;;  %v417_v11 = vpack.c.bf16 %v1853_v8, %v1851_v7  ;;  %v1344_v13 = vld [vmem:[#allocation5] ss:$8 sps:$4 sm:$0xff]   ;;  %v1350_v17 = vld [vmem:[#allocation5 + $0x24] ss:$8 sps:$4 sm:$0xff]   ;;  %v369_v63 = vmax.f32 %v1855_v9, %v1851_v7  ;;  %v363_v3 = vmax.f32 %v1843_v2, %v1839_v0  ;;  %s345_s17 = scalar_lea.vmem [#allocation10], %s1160_s29  ;;  %s1948_s23 = scalar_lea.hbm %s2079_s6, %s1193_s11 }
  0x93   : > { %459 = vmatpush1.bf16.xpose.msra.mxu0 %v414_v5  ;;  %v416_v12 = vpack.c.bf16 %v1857_v10, %v1855_v9  ;;  %v1347_v14 = vld [vmem:[#allocation5 + $0x14] ss:$8 sps:$4 sm:$0xff]   ;;  %v1356_v15 = vld [vmem:[#allocation7] sm:$0xff]   ;;  %v1349_v16 = vld [vmem:[#allocation5 + $0x10] ss:$8 sps:$4 sm:$0xff]   ;;  %v372_v5 = vmax.f32 %v1857_v10, %v1853_v8  ;;  %s1001_s14 = sshll.u32 %s345_s17, 4  ;;  %s1002_s14 = int_to_ptr.vmem [resolvable:$true] %s1001_s14 }
  0x94   : > { %523 = vmatprep.subr.bf16.mxu1 %v417_v11  ;;  %1218 = vmatprep.subr.bf16.mxu0 %v1356_v15  ;;  %v1352_v18 = vld [vmem:[#allocation5 + $0x20] ss:$8 sps:$4 sm:$0xff]   ;;  %v1353_v19 = vld [vmem:[#allocation5 + $0x34] ss:$8 sps:$4 sm:$0xff]   ;;  %v1355_v20 = vld [vmem:[#allocation5 + $0x30] ss:$8 sps:$4 sm:$0xff]  }
  0x95   : > { %524 = vmatpush1.bf16.xpose.msra.mxu1 %v416_v12  ;;  %v1357_v21 = vld [vmem:[#allocation8] sm:$0xff]   ;;  %v1358_v62 = vld [vmem:[#allocation8 + $0x8] sm:$0xff]   ;;  %370 = vmax.xlane.f32.xlu1 %v369_v63  ;;  %v1170_v11 = vld [vmem:[%s2076_s3] ss:$0 sm:$0xff]  ;;  %s983_s10 = scalar_lea.sflag [#allocation4], %s1823_s1  ;;  %s1473_s13 = scalar_lea.vmem %s1002_s14, 32 }
  0x96   : > { %1236 = vmatprep.subr.bf16.mxu1 %v1357_v21  ;;  %364 = vmax.xlane.f32.xlu0 %v363_v3  ;;  %p1474_p10 = scmp.ne.s32.totalorder %s1002_s14, %s1473_s13  ;;  %s1591_s15 = smov [#allocation10]  }
  0x97   : > { %s1477_s8 = sshll.u32 %s1591_s15, 4  ;;  %s1478_s8 = int_to_ptr.vmem [resolvable:$false] %s1477_s8 }
  0x98   : > { %p1475_p3 = pnand %p1474_p10, %p1775_p5  ;;  %s1479_s19 = scalar_lea.vmem %s1478_s8, 64 }
  0x99   : > { %373 = vmax.xlane.f32.xlu1 %v372_v5  ;;  %p1480_p12 = scmp.lt.s32.totalorder %s1002_s14, %s1478_s8  ;;  %p1481_p2 = scmp.lt.s32.totalorder %s1479_s19, %s1473_s13 }
  0x9a   : > { %491 = vmatmul.mubr.bf16.vlgmr.msra.gmra.mrb[0].mxu0 %v1344_v13  ;;  %367 = vmax.xlane.f32.xlu0 %v366_v6  ;;  %p1476_p7 = pneg %p1475_p3 }
  0x9b   : > { %498 = vmatprep.mubr.bf16.mxu0 %v1347_v14  ;;  %1219 = vmatpush3.bf16.msra.mxu0 %v1356_v15  ;;  %p1482_p1 = por %p1481_p2, %p1480_p12 }
  0x9c   : > { %556 = vmatmul.mubr.bf16.vlgmr.msra.gmra.mrb[0].mxu1 %v1344_v13 }
  0x9d   : > { %563 = vmatprep.mubr.bf16.mxu1 %v1347_v14  ;;  %1237 = vmatpush3.bf16.msra.mxu1 %v1357_v21  ;;  %p1483_p4 = pnand %p1482_p1, %p1476_p7 }
  0x9e   : > { %1238 = vmatprep.subr.bf16.mxu1 %v1358_v62 }
  0xa1   : > { %1239 = vmatpush3.bf16.msra.mxu1 %v1358_v62 }
  0xa2   : > { %499 = vmatmul.mubr.bf16.gmra.mrb[4].mxu0 %v1349_v16 }
  0xa3   : > { %506 = vmatprep.mubr.bf16.mxu0 %v1350_v17 }
  0xa4   : > { %564 = vmatmul.mubr.bf16.gmra.mrb[4].mxu1 %v1349_v16 }
  0xa5   : > { %571 = vmatprep.mubr.bf16.mxu1 %v1350_v17 }
  0xaa   : > { %507 = vmatmul.mubr.bf16.gmra.mrb[8].mxu0 %v1352_v18 }
  0xab   : > { %514 = vmatprep.mubr.bf16.mxu0 %v1353_v19 }
  0xac   : > { %572 = vmatmul.mubr.bf16.gmra.mrb[8].mxu1 %v1352_v18 }
  0xad   : > { %579 = vmatprep.mubr.bf16.mxu1 %v1353_v19 }
  0xb2   : > { %515 = vmatmul.mubr.bf16.gmra.mrb[12].mxu0 %v1355_v20 }
  0xb4   : > { %580 = vmatmul.mubr.bf16.gmra.mrb[12].mxu1 %v1355_v20 }
 0x122   : > { %v371_v62 = vpop.xlane.xlu1 %370 }
 0x123   : > { %v365_v63 = vpop.xlane.xlu0 %364 }
 0x16d   : > { %v492_v22 = vpop.f32.mrb[0].mxu0 }
 0x16e   : > { %v494_v23 = vpop.f32.mrb[1].mxu0 }
 0x16f   : > { %v495_v24 = vpop.f32.mrb[2].mxu0  ;;  %v557_v27 = vpop.f32.mrb[0].mxu1 }
 0x170   : > { %v588_v25 = vpack.c.bf16 %v495_v24, %v492_v22  ;;  %v497_v26 = vpop.f32.mrb[3].mxu0  ;;  %v559_v28 = vpop.f32.mrb[1].mxu1 }
 0x171   : > { %v560_v29 = vpop.f32.mrb[2].mxu1 }
 0x172   : > { %1220 = vmatprep.mubr.msk.bf16.mxu0 %vm611_vm0, %v588_v25  ;;  %v592_v30 = vpack.c.bf16 %v560_v29, %v557_v27  ;;  %v562_v31 = vpop.f32.mrb[3].mxu1 }
 0x175   : > { %v500_v32 = vpop.f32.mrb[4].mxu0 }
 0x176   : > { %v502_v33 = vpop.f32.mrb[5].mxu0 }
 0x177   : > { %v503_v34 = vpop.f32.mrb[6].mxu0  ;;  %v565_v37 = vpop.f32.mrb[4].mxu1 }
 0x178   : > { %v589_v35 = vpack.c.bf16 %v503_v34, %v500_v32  ;;  %v505_v36 = vpop.f32.mrb[7].mxu0  ;;  %v567_v38 = vpop.f32.mrb[5].mxu1 }
 0x179   : > { %v568_v39 = vpop.f32.mrb[6].mxu1 }
 0x17a   : > { %1221 = vmatmul.mubr.msk.bf16.vlgmr.msra.gmra.mrb[16].mxu0 %vm611_vm0, %v589_v35  ;;  %v593_v40 = vpack.c.bf16 %v568_v39, %v565_v37  ;;  %v570_v41 = vpop.f32.mrb[7].mxu1 }
 0x17d   : > { %v508_v42 = vpop.f32.mrb[8].mxu0 }
 0x17e   : > { %v510_v43 = vpop.f32.mrb[9].mxu0 }
 0x17f   : > { %v511_v44 = vpop.f32.mrb[10].mxu0  ;;  %v573_v47 = vpop.f32.mrb[8].mxu1 }
 0x180   : > { %v590_v45 = vpack.c.bf16 %v511_v44, %v508_v42  ;;  %v513_v46 = vpop.f32.mrb[11].mxu0  ;;  %v575_v48 = vpop.f32.mrb[9].mxu1 }
 0x181   : > { %v576_v49 = vpop.f32.mrb[10].mxu1 }
 0x182   : > { %1224 = vmatprep.mubr.msk.bf16.mxu0 %vm611_vm0, %v590_v45  ;;  %v594_v50 = vpack.c.bf16 %v576_v49, %v573_v47  ;;  %v578_v51 = vpop.f32.mrb[11].mxu1 }
 0x185   : > { %v516_v52 = vpop.f32.mrb[12].mxu0 }
 0x186   : > { %v518_v53 = vpop.f32.mrb[13].mxu0 }
 0x187   : > { %v519_v54 = vpop.f32.mrb[14].mxu0  ;;  %v581_v57 = vpop.f32.mrb[12].mxu1 }
 0x188   : > { %v591_v55 = vpack.c.bf16 %v519_v54, %v516_v52  ;;  %v521_v56 = vpop.f32.mrb[15].mxu0  ;;  %v583_v58 = vpop.f32.mrb[13].mxu1 }
 0x189   : > { %v584_v59 = vpop.f32.mrb[14].mxu1 }
 0x18a   : > { %1225 = vmatmul.mubr.msk.bf16.gmra.mrb[20].mxu0 %vm611_vm0, %v591_v55  ;;  %v595_v60 = vpack.c.bf16 %v584_v59, %v581_v57  ;;  %v586_v61 = vpop.f32.mrb[15].mxu1 }
 0x18b   : > { %1228 = vmatprep.mubr.msk.bf16.mxu0 %vm611_vm0, %v592_v30 }
 0x192   : > { %1229 = vmatmul.mubr.msk.bf16.gmra.mrb[24].mxu0 %vm611_vm0, %v593_v40 }
 0x193   : > { %1232 = vmatprep.mubr.msk.bf16.mxu0 %vm611_vm0, %v594_v50 }
 0x19a   : > { %1233 = vmatmul.mubr.msk.bf16.gmra.mrb[28].mxu0 %vm611_vm0, %v595_v60  ;;  %v379_v60 = vlaneseq }
 0x19c   : > { %v380_v61 = vand.u32 127, %v379_v60  ;;  %v382_v3 = vshrl.u32 %v379_v60, 7 }
 0x19e   : > { %v385_v5 = vadd.s32 4294967288, %v380_v61  ;;  %v383_v6 = vsub.s32 %v380_v61, %v382_v3 }
 0x24d   : > { %v1222_v12 = vpop.f32.mrb[16].mxu0 }
 0x24e   : > { %v670_v13 = vpop.f32.mrb[17].mxu0  ;;  %v1884_v0 = vadd.f32 %v1222_v12, %v1170_v11  ;;  %v374_v12 = vpop.xlane.xlu1 %373 }
 0x24f   : > { %v1882_v7 = vadd.f32 %v1170_v11, %v670_v13  ;;  %v1223_v9 = vpop.f32.mrb[18].mxu0  ;;  %v368_v13 = vpop.xlane.xlu0 %367 }
 0x250   : > { %v1886_v2 = vadd.f32 %v1223_v9, %v1170_v11  ;;  %v673_v14 = vpop.f32.mrb[19].mxu0  ;;  %v735_v15 = vmax.f32 %v1884_v0, 0.0  ;;  %v395_v9 = vrot.slane %v371_v62, %v383_v6 }
 0x251   : > { %v1888_v8 = vadd.f32 %v1170_v11, %v673_v14  ;;  %v733_v4 = vmax.f32 %v1882_v7, 0.0  ;;  %v384_v14 = vrot.slane %v365_v63, %v383_v6 }
 0x252   : > { %v736_v1 = vmax.f32 %v1886_v2, 0.0 }
 0x253   : > { %v734_v10 = vmax.f32 %v1888_v8, 0.0 }
 0x254   : > { %v750_v17 = vpack.c.bf16 %v736_v1, %v735_v15 }
 0x255   : > { %v749_v16 = vpack.c.bf16 %v734_v10, %v733_v4 }
 0x257   : > { %1240 = vmatprep.mubr.msk.bf16.mxu1 %vm780_vm1, %v749_v16 }
 0x258   : > { %1241 = vmatmul.mubr.msk.bf16.vlgmr.msra.gmra.mrb[16].mxu1 %vm780_vm1, %v750_v17 }
 0x25d   : > { %v1226_v18 = vpop.f32.mrb[20].mxu0 }
 0x25e   : > { %v686_v19 = vpop.f32.mrb[21].mxu0  ;;  %v1898_v22 = vadd.f32 %v1226_v18, %v1170_v11 }
 0x25f   : > { %v1896_v20 = vadd.f32 %v1170_v11, %v686_v19  ;;  %v1227_v21 = vpop.f32.mrb[22].mxu0 }
 0x260   : > { %v1900_v23 = vadd.f32 %v1227_v21, %v1170_v11  ;;  %v689_v24 = vpop.f32.mrb[23].mxu0  ;;  %v739_v29 = vmax.f32 %v1898_v22, 0.0 }
 0x261   : > { %v1902_v25 = vadd.f32 %v1170_v11, %v689_v24  ;;  %v737_v27 = vmax.f32 %v1896_v20, 0.0 }
 0x262   : > { %v740_v26 = vmax.f32 %v1900_v23, 0.0 }
 0x263   : > { %v738_v28 = vmax.f32 %v1902_v25, 0.0 }
 0x264   : > { %v752_v32 = vpack.c.bf16 %v740_v26, %v739_v29 }
 0x265   : > { %v751_v30 = vpack.c.bf16 %v738_v28, %v737_v27  ;;  %v1230_v31 = vpop.f32.mrb[24].mxu0 }
 0x266   : > { %v702_v33 = vpop.f32.mrb[25].mxu0  ;;  %v1911_v36 = vadd.f32 %v1230_v31, %v1170_v11 }
 0x267   : > { %v1908_v34 = vadd.f32 %v1170_v11, %v702_v33  ;;  %v1231_v35 = vpop.f32.mrb[26].mxu0  ;;  %1244 = vmatprep.mubr.msk.bf16.mxu1 %vm780_vm1, %v751_v30 }
 0x268   : > { %v1913_v37 = vadd.f32 %v1231_v35, %v1170_v11  ;;  %v705_v38 = vpop.f32.mrb[27].mxu0  ;;  %1245 = vmatmul.mubr.msk.bf16.gmra.mrb[20].mxu1 %vm780_vm1, %v752_v32  ;;  %v743_v43 = vmax.f32 %v1911_v36, 0.0 }
 0x269   : > { %v1916_v39 = vadd.f32 %v1170_v11, %v705_v38  ;;  %v741_v41 = vmax.f32 %v1908_v34, 0.0 }
 0x26a   : > { %v744_v40 = vmax.f32 %v1913_v37, 0.0 }
 0x26b   : > { %v742_v42 = vmax.f32 %v1916_v39, 0.0 }
 0x26c   : > { %v754_v46 = vpack.c.bf16 %v744_v40, %v743_v43 }
 0x26d   : > { %v753_v44 = vpack.c.bf16 %v742_v42, %v741_v41  ;;  %v1234_v45 = vpop.f32.mrb[28].mxu0 }
 0x26e   : > { %v718_v47 = vpop.f32.mrb[29].mxu0  ;;  %v1925_v50 = vadd.f32 %v1234_v45, %v1170_v11 }
 0x26f   : > { %v1922_v48 = vadd.f32 %v1170_v11, %v718_v47  ;;  %v1235_v49 = vpop.f32.mrb[30].mxu0  ;;  %1248 = vmatprep.mubr.msk.bf16.mxu1 %vm780_vm1, %v753_v44 }
 0x270   : > { %v1927_v51 = vadd.f32 %v1235_v49, %v1170_v11  ;;  %v721_v52 = vpop.f32.mrb[31].mxu0  ;;  %1249 = vmatmul.mubr.msk.bf16.gmra.mrb[24].mxu1 %vm780_vm1, %v754_v46  ;;  %v747_v57 = vmax.f32 %v1925_v50, 0.0 }
 0x271   : > { %v1930_v53 = vadd.f32 %v1170_v11, %v721_v52  ;;  %v745_v55 = vmax.f32 %v1922_v48, 0.0  ;;  %v388_v11 = vsub.s32 %v385_v5, %v382_v3 }
 0x272   : > { %v748_v54 = vmax.f32 %v1927_v51, 0.0 }
 0x273   : > { %v746_v56 = vmax.f32 %v1930_v53, 0.0  ;;  %v399_v1 = vrot.slane %v374_v12, %v388_v11  ;;  %v389_v4 = vrot.slane %v368_v13, %v388_v11 }
 0x274   : > { %v756_v59 = vpack.c.bf16 %v748_v54, %v747_v57 }
 0x275   : > { %v755_v58 = vpack.c.bf16 %v746_v56, %v745_v55  ;;  %v400_v10 = vsel %vm390_vm2, %v399_v1, %v395_v9  ;;  %v391_v15 = vsel %vm390_vm2, %v389_v4, %v384_v14 }
 0x276   : > { %v402_v16 = vsel %vm401_vm3, %v400_v10, %v391_v15 }
 0x277   : > { %1252 = vmatprep.mubr.msk.bf16.mxu1 %vm780_vm1, %v755_v58  ;;  %405 = vst.msk [vmem:[%s345_s17] sm:$0x3] %vm404_vm4, %v402_v16 }
 0x278   : > { %1253 = vmatmul.mubr.msk.bf16.gmra.mrb[28].mxu1 %vm780_vm1, %v756_v59 }
 0x279   : > { %1486 = shalt.err (!%p1483_p4)
}
 0x27a   : > { %s1487_s21 = scalar_lea.hbm %s1948_s23, 32  ;;  %s1491_s17 = scalar_lea.hbm %s2079_s6, 64 }
 0x27b   : > { %p1488_p9 = scmp.ne.s32.totalorder %s1948_s23, %s1487_s21  ;;  %p1492_p11 = scmp.lt.u32.totalorder %s1948_s23, %s2079_s6 }
 0x27c   : > { %p1493_p13 = scmp.lt.u32.totalorder %s1491_s17, %s1487_s21  ;;  %p1495_p10 = scmp.lt.u32.totalorder %s1487_s21, %s1948_s23 }
 0x27d   : > { %p1489_p0 = pnand %p1488_p9, %p1775_p5 }
 0x27e   : > { %p1494_p6 = por %p1493_p13, %p1492_p11 }
 0x27f   : > { %p1490_p8 = pneg %p1489_p0 }
 0x280   : > { %p1496_p3 = por %p1495_p10, %p1494_p6 }
 0x282   : > { %p1497_p7 = pnand %p1496_p3, %p1490_p8 }
 0x284   : > { %1500 = shalt.err (!%p1497_p7)
}
 0x285   : > { %1270 = dma.vmem_to_hbm [thread:$0]  (%p1775_p5), %s1002_s14, 32, %s1948_s23, %s983_s10   ;;  %v1971_v17 = vld [vmem:[%s2078_s5] ss:$0 sm:$0xff]  ;;  %vm980_vm5 = vcmask 254976  }
 0x286   : > { %s352_s14 = scalar_lea.vmem [#allocation11], %s1160_s29  ;;  %s2028_s19 = scalar_lea.hbm %s2080_s7, %s1193_s11 }
 0x287   : > { %s1014_s23 = sshll.u32 %s352_s14, 4  ;;  %s988_s21 = scalar_lea.sflag [#allocation12], %s1823_s1  ;;  %s2030_s23 = int_to_ptr.vmem [resolvable:$true] %s1014_s23 }
 0x288   : > { %s1501_s29 = scalar_lea.vmem %s2030_s23, 32  ;;  %s1592_s28 = smov [#allocation11]  }
 0x289   : > { %p1502_p12 = scmp.ne.s32.totalorder %s2030_s23, %s1501_s29  ;;  %s1505_s30 = sshll.u32 %s1592_s28, 4  ;;  %s1506_s30 = int_to_ptr.vmem [resolvable:$false] %s1505_s30 }
 0x28a   : > { %s1507_s9 = scalar_lea.vmem %s1506_s30, 64  ;;  %p1508_p4 = scmp.lt.s32.totalorder %s2030_s23, %s1506_s30 }
 0x28b   : > { %p1503_p2 = pnand %p1502_p12, %p1775_p5  ;;  %p1509_p9 = scmp.lt.s32.totalorder %s1507_s9, %s1501_s29 }
 0x28d   : > { %p1504_p1 = pneg %p1503_p2  ;;  %p1510_p0 = por %p1509_p9, %p1508_p4 }
 0x28f   : > { %p1511_p8 = pnand %p1510_p0, %p1504_p1 }
 0x32b   : > { %v1242_v18 = vpop.f32.mrb[16].mxu1 }
 0x32c   : > { %v848_v19 = vadd.f32 %v1242_v18, %v1971_v17  ;;  %v839_v21 = vpop.f32.mrb[17].mxu1 }
 0x32d   : > { %v840_v24 = vadd.f32 %v1971_v17, %v839_v21  ;;  %v1243_v26 = vpop.f32.mrb[18].mxu1 }
 0x32e   : > { %v904_v27 = vadd.f32 %v848_v19, %v1884_v0  ;;  %v851_v28 = vadd.f32 %v1243_v26, %v1971_v17  ;;  %v842_v29 = vpop.f32.mrb[19].mxu1 }
 0x32f   : > { %v902_v30 = vadd.f32 %v840_v24, %v1882_v7  ;;  %v843_v31 = vadd.f32 %v1971_v17, %v842_v29 }
 0x330   : > { %v920_v32 = vmax.f32 %v904_v27, 0.0  ;;  %v905_v33 = vadd.f32 %v851_v28, %v1886_v2 }
 0x331   : > { %v918_v35 = vmax.f32 %v902_v30, 0.0  ;;  %v903_v38 = vadd.f32 %v843_v31, %v1888_v8 }
 0x332   : > { %v936_v40 = vsel %vm780_vm1, %v920_v32, -inf  ;;  %v921_v41 = vmax.f32 %v905_v33, 0.0 }
 0x333   : > { %v934_v42 = vsel %vm780_vm1, %v918_v35, -inf  ;;  %v919_v43 = vmax.f32 %v903_v38, 0.0 }
 0x334   : > { %v937_v0 = vmax.f32 %v934_v42, %v936_v40  ;;  %v938_v44 = vsel %vm780_vm1, %v921_v41, -inf }
 0x335   : > { %v935_v45 = vsel %vm780_vm1, %v919_v43, -inf }
 0x336   : > { %v939_v7 = vmax.f32 %v935_v45, %v938_v44 }
 0x33b   : > { %v1246_v46 = vpop.f32.mrb[20].mxu1 }
 0x33c   : > { %v864_v47 = vadd.f32 %v1246_v46, %v1971_v17  ;;  %v855_v49 = vpop.f32.mrb[21].mxu1 }
 0x33d   : > { %v856_v2 = vadd.f32 %v1971_v17, %v855_v49  ;;  %v1247_v52 = vpop.f32.mrb[22].mxu1 }
 0x33e   : > { %v908_v8 = vadd.f32 %v864_v47, %v1898_v22  ;;  %v867_v54 = vadd.f32 %v1247_v52, %v1971_v17  ;;  %v858_v55 = vpop.f32.mrb[23].mxu1 }
 0x33f   : > { %v906_v56 = vadd.f32 %v856_v2, %v1896_v20  ;;  %v859_v57 = vadd.f32 %v1971_v17, %v858_v55 }
 0x340   : > { %v909_v58 = vadd.f32 %v867_v54, %v1900_v23  ;;  %v924_v59 = vmax.f32 %v908_v8, 0.0 }
 0x341   : > { %v922_v60 = vmax.f32 %v906_v56, 0.0  ;;  %v907_v61 = vadd.f32 %v859_v57, %v1902_v25 }
 0x342   : > { %v925_v63 = vmax.f32 %v909_v58, 0.0  ;;  %v944_v12 = vsel %vm780_vm1, %v924_v59, -inf }
 0x343   : > { %v940_v62 = vsel %vm780_vm1, %v922_v60, -inf  ;;  %v923_v3 = vmax.f32 %v907_v61, 0.0  ;;  %v1250_v5 = vpop.f32.mrb[24].mxu1 }
 0x344   : > { %v941_v6 = vmax.f32 %v937_v0, %v940_v62  ;;  %v880_v22 = vadd.f32 %v1250_v5, %v1971_v17  ;;  %v871_v11 = vpop.f32.mrb[25].mxu1  ;;  %v946_v10 = vsel %vm780_vm1, %v925_v63, -inf }
 0x345   : > { %v942_v20 = vsel %vm780_vm1, %v923_v3, -inf  ;;  %v872_v13 = vadd.f32 %v1971_v17, %v871_v11  ;;  %v1251_v23 = vpop.f32.mrb[26].mxu1 }
 0x346   : > { %v945_v9 = vmax.f32 %v941_v6, %v944_v12  ;;  %v943_v14 = vmax.f32 %v939_v7, %v942_v20  ;;  %v912_v25 = vadd.f32 %v880_v22, %v1911_v36  ;;  %v883_v1 = vadd.f32 %v1251_v23, %v1971_v17  ;;  %v874_v4 = vpop.f32.mrb[27].mxu1 }
 0x347   : > { %v910_v15 = vadd.f32 %v872_v13, %v1908_v34  ;;  %v875_v16 = vadd.f32 %v1971_v17, %v874_v4 }
 0x348   : > { %v947_v18 = vmax.f32 %v943_v14, %v946_v10  ;;  %v928_v19 = vmax.f32 %v912_v25, 0.0  ;;  %v913_v21 = vadd.f32 %v883_v1, %v1913_v37 }
 0x349   : > { %v926_v24 = vmax.f32 %v910_v15, 0.0  ;;  %v911_v26 = vadd.f32 %v875_v16, %v1916_v39 }
 0x34a   : > { %v948_v27 = vmax.f32 %v945_v9, %v947_v18  ;;  %v957_v28 = vsel %vm780_vm1, %v928_v19, -inf  ;;  %v929_v36 = vmax.f32 %v913_v21, 0.0 }
 0x34b   : > { %v955_v29 = vsel %vm780_vm1, %v926_v24, -inf  ;;  %v927_v30 = vmax.f32 %v911_v26, 0.0  ;;  %v1254_v31 = vpop.f32.mrb[28].mxu1 }
 0x34c   : > { %v958_v32 = vmax.f32 %v955_v29, %v957_v28  ;;  %v959_v34 = vsel %vm780_vm1, %v929_v36, -inf  ;;  %v896_v33 = vadd.f32 %v1254_v31, %v1971_v17  ;;  %v887_v35 = vpop.f32.mrb[29].mxu1  ;;  %v949_v49 = vrot.slane %v948_v27, 4 }
 0x34d   : > { %v956_v38 = vsel %vm780_vm1, %v927_v30, -inf  ;;  %v888_v37 = vadd.f32 %v1971_v17, %v887_v35  ;;  %v1255_v40 = vpop.f32.mrb[30].mxu1 }
 0x34e   : > { %v960_v39 = vmax.f32 %v956_v38, %v959_v34  ;;  %v916_v41 = vadd.f32 %v896_v33, %v1925_v50  ;;  %v899_v42 = vadd.f32 %v1255_v40, %v1971_v17  ;;  %v890_v43 = vpop.f32.mrb[31].mxu1 }
 0x34f   : > { %v914_v0 = vadd.f32 %v888_v37, %v1922_v48  ;;  %v891_v44 = vadd.f32 %v1971_v17, %v890_v43  ;;  %v950_v48 = vmax.f32 %v948_v27, %v949_v49 }
 0x350   : > { %v917_v45 = vadd.f32 %v899_v42, %v1927_v51  ;;  %v932_v7 = vmax.f32 %v916_v41, 0.0 }
 0x351   : > { %v930_v46 = vmax.f32 %v914_v0, 0.0  ;;  %v915_v47 = vadd.f32 %v891_v44, %v1930_v53  ;;  %v951_v58 = vrot.slane %v950_v48, 2 }
 0x352   : > { %v933_v52 = vmax.f32 %v917_v45, 0.0  ;;  %v965_v50 = vsel %vm780_vm1, %v932_v7, -inf }
 0x353   : > { %v961_v2 = vsel %vm780_vm1, %v930_v46, -inf  ;;  %v931_v8 = vmax.f32 %v915_v47, 0.0  ;;  %v952_v60 = vmax.f32 %v950_v48, %v951_v58 }
 0x354   : > { %v962_v54 = vmax.f32 %v958_v32, %v961_v2  ;;  %v967_v51 = vsel %vm780_vm1, %v933_v52, -inf }
 0x355   : > { %v963_v55 = vsel %vm780_vm1, %v931_v8, -inf  ;;  %v953_v63 = vrot.slane %v952_v60, 1 }
 0x356   : > { %v966_v56 = vmax.f32 %v962_v54, %v965_v50  ;;  %v964_v17 = vmax.f32 %v960_v39, %v963_v55 }
 0x357   : > { %v954_v6 = vmax.f32 %v952_v60, %v953_v63 }
 0x358   : > { %v968_v57 = vmax.f32 %v964_v17, %v967_v51 }
 0x35a   : > { %v969_v53 = vmax.f32 %v966_v56, %v968_v57 }
 0x35c   : > { %v970_v59 = vrot.slane %v969_v53, 4 }
 0x35e   : > { %v971_v61 = vmax.f32 %v969_v53, %v970_v59 }
 0x360   : > { %v972_v62 = vrot.slane %v971_v61, 2 }
 0x362   : > { %v973_v3 = vmax.f32 %v971_v61, %v972_v62 }
 0x364   : > { %v974_v5 = vrot.slane %v973_v3, 1 }
 0x366   : > { %v975_v22 = vmax.f32 %v973_v3, %v974_v5 }
 0x368   : > { %v978_v11 = vsel %vm401_vm3, %v975_v22, %v954_v6 }
 0x369   : > { %981 = vst.msk [vmem:[%s352_s14] sm:$0x3] %vm980_vm5, %v978_v11 }
 0x36a   : > { %1514 = shalt.err (!%p1511_p8)
}
 0x36b   : > { %s1515_s1 = scalar_lea.hbm %s2028_s19, 32  ;;  %s1519_s16 = scalar_lea.hbm %s2080_s7, 64 }
 0x36c   : > { %p1516_p11 = scmp.ne.s32.totalorder %s2028_s19, %s1515_s1  ;;  %p1520_p10 = scmp.lt.u32.totalorder %s2028_s19, %s2080_s7 }
 0x36d   : > { %p1521_p3 = scmp.lt.u32.totalorder %s1519_s16, %s1515_s1  ;;  %p1523_p12 = scmp.lt.u32.totalorder %s1515_s1, %s2028_s19 }
 0x36e   : > { %p1517_p13 = pnand %p1516_p11, %p1775_p5 }
 0x36f   : > { %p1522_p7 = por %p1521_p3, %p1520_p10 }
 0x370   : > { %p1518_p6 = pneg %p1517_p13 }
 0x371   : > { %p1524_p2 = por %p1523_p12, %p1522_p7 }
 0x373   : > { %p1525_p1 = pnand %p1524_p2, %p1518_p6 }
 0x375   : > { %1528 = shalt.err (!%p1525_p1)
}
 0x376   : > { %1271 = dma.vmem_to_hbm [thread:$0]  (%p1775_p5), %s2030_s23, 32, %s2028_s19, %s988_s21  }
 0x377 PF: > { %s2102_s15 = sld [smem:[#allocation18_spill]]  ;;  %s1026_s14 = sand.u32 1, %s1567_s24  }
 0x378   : > { %p2104_p9 = scmp.ge.s32.totalorder %s1579_s27, 2  ;;  %s1027_s10 = scalar_lea.sflag [#allocation4], %s1026_s14 }
 0x37d   : > { %p2103_p4 = scmp.ne.s32.totalorder %s2102_s15, 0 }
 0x37f   : > { %p1289_p0 = pnand %p2104_p9, %p2103_p4 }
 0x381   : > { %1558 = dma.done.wait (!%p1289_p0), %s1027_s10, 32  }
 0x382   : > { %1560 = vsyncadd (!%p1289_p0), %s1027_s10, 4294967264  ;;  %s1036_s8 = scalar_lea.sflag [#allocation12], %s1026_s14 }
 0x383   : > { %1562 = dma.done.wait (!%p1289_p0), %s1036_s8, 32  }
 0x384   : > { %1564 = vsyncadd (!%p1289_p0), %s1036_s8, 4294967264  ;;  %p26_p5 = scmp.ge.s32.totalorder %s1743_s18, 4   ;;  %s2105_s24 = smov %s1571_s25 }
 0x385   : > { %s2106_s25 = smov %s1575_s26  ;;  %s2107_s26 = smov %s1771_s12 }
 0x386   : > { %s2108_s27 = smov %s1743_s18  ;;  %28 = sbr.rel (!%p26_p5) target bundleno = 11 (0xb), region = 118 }
 0x38d   :  { %1041 = vsyncpa [#allocation3], 1 }
 0x38e   :  { %1043 = vsyncpa [#allocation3 + $0x1], 1 }
 0x38f   :  { %1044 = vsyncpa [#allocation6], 1 }
 0x390   :  { %1045 = vsyncpa [#allocation9], 1 }
 0x391   :  { %1046 = vsyncpa [#allocation4], 1 }
 0x392   :  { %1048 = vsyncpa [#allocation4 + $0x1], 1 }
 0x393   :  { %1049 = vsyncpa [#allocation12], 1 }
 0x394   :  { %1051 = vsyncpa [#allocation12 + $0x1], 1 }

// kernel: tpu_custom_call.1
= control target key start
LH: loop header
LB: loop body
LE: loop exit
PB: predicated region body
PF: predicated region fallthrough
CT: control target
= control target key end

     0   :  { %s2073_s0 = inlined_call_operand.hbm [shape: f32[4,16,256], index: 0, kind: input, shape index: {}]   ;;  %s2074_s1 = inlined_call_operand.hbm [shape: bf16[64,256], index: 1, kind: input, shape index: {}]   ;;  %s2075_s2 = inlined_call_operand.hbm [shape: bf16[16,32], index: 2, kind: input, shape index: {}]   ;;  %s2076_s3 = inlined_call_operand.vmem [shape: f32[1,32], index: 3, kind: input, shape index: {}]   ;;  %s2077_s4 = inlined_call_operand.hbm [shape: bf16[32,32], index: 4, kind: input, shape index: {}]   ;;  %s2078_s5 = inlined_call_operand.vmem [shape: f32[1,32], index: 5, kind: input, shape index: {}]   ;;  %s2079_s6 = inlined_call_operand.hbm [shape: f32[2,2,16], index: 6, kind: output, shape index: {0}]   ;;  %s2080_s7 = inlined_call_operand.hbm [shape: f32[2,2,32], index: 7, kind: output, shape index: {1}]  }
   0x1   :  { %2085 = sst [smem:[#allocation19_spill]] %s2074_s1 }
   0x2   :  { %13 = vsyncpa [#allocation3], 0 }
   0x3   :  { %15 = vsyncpa [#allocation3 + $0x1], 0 }
   0x4   :  { %16 = vsyncpa [#allocation6], 0 }
   0x5   :  { %17 = vsyncpa [#allocation9], 0 }
   0x6   :  { %18 = vsyncpa [#allocation4], 0 }
   0x7   :  { %20 = vsyncpa [#allocation4 + $0x1], 0 }
   0x8   :  { %21 = vsyncpa [#allocation12], 0 }
   0x9   :  { %23 = vsyncpa [#allocation12 + $0x1], 0  ;;  %s1633_s24 = smov 0   ;;  %s1635_s25 = smov 0  }
   0xa   :  { %s1637_s26 = smov 0   ;;  %s1639_s27 = smov 0  }
   0xb LB: > { %s1654_s28 = sadd.s32 4294967295, %s1579_s27   ;;  %s1145_s29 = sadd.s32 4294967294, %s1579_s27   ;;  %s1579_s27 = sphi %s1639_s27, %s2108_s27   ;;  %s1575_s26 = sphi %s1637_s26, %s2107_s26   ;;  %s1571_s25 = sphi %s1635_s25, %s2106_s25   ;;  %s1567_s24 = sphi %s1633_s24, %s2105_s24  }
   0xc   : > { %p49_p0 = scmp.ne.s32.totalorder %s1571_s25, %s1567_s24  ;;  %p2081_p1 = scmp.eq.s32.totalorder %s1654_s28, 0 }
   0xd   : > { %p184_p3 = scmp.eq.s32.totalorder %s1145_s29, 1  ;;  %p1146_p5 = scmp.ge.s32.totalorder %s1579_s27, 1 }
   0xe   : > { %p1663_p4 = por %p2081_p1, %p49_p0  ;;  %p217_p7 = scmp.lt.s32.totalorder %s1579_s27, 3 }
   0xf   : > { %p1668_p6 = por %p184_p3, %p49_p0  ;;  %s1581_s10 = smov [#allocation5]  }
  0x10   : > { %s2086_s30 = scalar_select %p1663_p4, 1, 0 }
  0x11   : > { %s2087_s8 = scalar_select %p1668_p6, 1, 0 }
  0x12   : > { %p1673_p8 = pnand %p1146_p5, %p217_p7  ;;  %s229_s11 = sshll.u32 %s1581_s10, 4  ;;  %s1677_s11 = int_to_ptr.vmem [resolvable:$true] %s229_s11 }
  0x13   : > { %2088 = sst [smem:[#allocation18_spill]] %s2087_s8  ;;  %s1582_s13 = smov [#allocation7]  }
  0x14   : > { %s2089_s9 = scalar_select %p1673_p8, 1, 0 }
  0x15   : > { %p1274_p9 = pneg %p1673_p8  ;;  %s242_s14 = sshll.u32 %s1582_s13, 4  ;;  %s1688_s14 = int_to_ptr.vmem [resolvable:$true] %s242_s14 }
  0x16   : > { %s2091_s1 = sld [smem:[#allocation19_spill]] }
  0x17   : > { %p1684_p11 = pnand %p1274_p9, %p2081_p1 }
  0x19   : > { %p1698_p13 = pneg %p1684_p11 }
  0x1c   : > { %s1359_s17 = scalar_lea.hbm %s2091_s1, 1024 }
  0x1d   : > { %p1360_p12 = scmp.ne.s32.totalorder %s2091_s1, %s1359_s17  ;;  %p1366_p5 = scmp.lt.u32.totalorder %s1359_s17, %s2091_s1 }
  0x1f   : > { %p1362_p0 = pnand %p1698_p13, %p1360_p12 }
  0x21   : > { %p1363_p3 = pneg %p1362_p0 }
  0x23   : > { %p1368_p7 = pnand %p1366_p5, %p1363_p3 }
  0x25   : > { %1371 = shalt.err (!%p1368_p7)
}
  0x26   : > { %s1372_s23 = scalar_lea.vmem %s1677_s11, 1024  ;;  %p1380_p2 = scmp.lt.s32.totalorder %s1677_s11, %s1677_s11 }
  0x27   : > { %p1373_p9 = scmp.ne.s32.totalorder %s1677_s11, %s1372_s23  ;;  %p1381_p6 = scmp.lt.s32.totalorder %s1372_s23, %s1372_s23 }
  0x29   : > { %p1375_p10 = pnand %p1373_p9, %p1698_p13  ;;  %p1382_p12 = por %p1381_p6, %p1380_p2 }
  0x2b   : > { %p1376_p1 = pneg %p1375_p10 }
  0x2d   : > { %p1383_p0 = pnand %p1382_p12, %p1376_p1 }
  0x2f   : > { %1386 = shalt.err (!%p1383_p0)
}
  0x30   : > { %s1583_s29 = smov 128   ;;  %s1584_s10 = smov 8  }
  0x31   : > { %1277 = dma.hbm_to_vmem [thread:$0]  (!%p1684_p11), %s2091_s1, 1024, %s1677_s11, [#allocation6], %s1583_s29, %s1583_s29, %s1584_s10  }
  0x32   : > { %s1387_s18 = scalar_lea.hbm %s2075_s2, 128 }
  0x33   : > { %p1388_p2 = scmp.ne.s32.totalorder %s2075_s2, %s1387_s18  ;;  %p1394_p10 = scmp.lt.u32.totalorder %s1387_s18, %s2075_s2 }
  0x35   : > { %p1390_p1 = pnand %p1388_p2, %p1698_p13 }
  0x37   : > { %p1391_p6 = pneg %p1390_p1 }
  0x39   : > { %p1396_p3 = pnand %p1394_p10, %p1391_p6 }
  0x3b   : > { %1399 = shalt.err (!%p1396_p3)
}
  0x3c   : > { %s1400_s11 = scalar_lea.vmem %s1688_s14, 128  ;;  %p1408_p12 = scmp.lt.s32.totalorder %s1688_s14, %s1688_s14 }
  0x3d   : > { %p1401_p5 = scmp.ne.s32.totalorder %s1688_s14, %s1400_s11  ;;  %p1409_p0 = scmp.lt.s32.totalorder %s1400_s11, %s1400_s11 }
  0x3f   : > { %p1403_p7 = pnand %p1401_p5, %p1698_p13  ;;  %p1410_p2 = por %p1409_p0, %p1408_p12 }
  0x41   : > { %p1404_p9 = pneg %p1403_p7 }
  0x43   : > { %p1411_p1 = pnand %p1410_p2, %p1404_p9 }
  0x45   : > { %1414 = shalt.err (!%p1411_p1)
}
  0x46   : > { %s1585_s29 = smov 64   ;;  %s1586_s10 = smov 4  }
  0x47   : > { %1280 = dma.hbm_to_vmem [thread:$0]  (!%p1684_p11), %s2075_s2, 128, %s1688_s14, [#allocation6], %s1585_s29, %s1585_s29, %s1586_s10  }
  0x48   : > { %s1587_s16 = smov [#allocation8]   ;;  %s1743_s18 = sadd.s32 1, %s1579_s27  }
  0x49   : > { %s258_s17 = sshll.u32 %s1587_s16, 4  ;;  %s1415_s22 = scalar_lea.hbm %s2077_s4, 256  ;;  %s259_s17 = int_to_ptr.vmem [resolvable:$true] %s258_s17 }
  0x4a   : > { %p1416_p6 = scmp.ne.s32.totalorder %s2077_s4, %s1415_s22  ;;  %p1422_p5 = scmp.lt.u32.totalorder %s1415_s22, %s2077_s4 }
  0x4c   : > { %p1418_p10 = pnand %p1416_p6, %p1698_p13 }
  0x4e   : > { %p1419_p3 = pneg %p1418_p10 }
  0x50   : > { %p1424_p7 = pnand %p1422_p5, %p1419_p3 }
  0x52   : > { %1427 = shalt.err (!%p1424_p7)
}
  0x53   : > { %s1428_s14 = scalar_lea.vmem %s259_s17, 256  ;;  %p1436_p2 = scmp.lt.s32.totalorder %s259_s17, %s259_s17 }
  0x54   : > { %p1429_p9 = scmp.ne.s32.totalorder %s259_s17, %s1428_s14  ;;  %p1437_p1 = scmp.lt.s32.totalorder %s1428_s14, %s1428_s14 }
  0x56   : > { %p1431_p12 = pnand %p1429_p9, %p1698_p13  ;;  %p1438_p4 = por %p1437_p1, %p1436_p2 }
  0x58   : > { %p1432_p0 = pneg %p1431_p12 }
  0x5a   : > { %p1439_p8 = pnand %p1438_p4, %p1432_p0 }
  0x5c   : > { %1442 = shalt.err (!%p1439_p8)
}
  0x5d   : > { %1283 = dma.hbm_to_vmem [thread:$0]  (!%p1684_p11), %s2077_s4, 256, %s259_s17, [#allocation9], %s1585_s29, %s1585_s29, %s1586_s10  }
  0x5e   : > { %s33_s1 = ssub.s32 %s1579_s27, %s1743_s18  ;;  %s36_s8 = sadd.s32 1, %s1575_s26 }
  0x5f   : > { %p34_p4 = scmp.eq.s32.totalorder %s33_s1, 0  ;;  %p43_p8 = scmp.ne.s32.totalorder %s1575_s26, %s1571_s25 }
  0x60   : > { %p44_p13 = scmp.eq.s32.totalorder %s1579_s27, 0  ;;  %p1298_p6 = scmp.lt.s32.totalorder %s1579_s27, 2 }
  0x61   : > { %s1771_s12 = scalar_select %p34_p4, %s1575_s26, %s36_s8  }
  0x62   : > { %p45_p10 = por %p44_p13, %p43_p8  ;;  %p2093_p3 = scmp.eq.s32.totalorder %s1654_s28, 1 }
  0x63   : > { %s275_s16 = sand.u32 1, %s1575_s26   ;;  %s1198_s19 = sshll.u32 %s1579_s27, 10 }
  0x64   : > { %p1775_p5 = por %p2093_p3, %p43_p8  ;;  %s1151_s21 = sshll.u32 %s275_s16, 6 }
  0x65   : > { %s1784_s29 = scalar_lea.hbm %s2073_s0, %s1198_s19  ;;  %s279_s10 = scalar_lea.vmem [#allocation2], %s1151_s21 }
  0x66   : > { %s287_s17 = sshll.u32 %s279_s10, 4  ;;  %p1786_p11 = pnand %p1298_p6, %p45_p10  ;;  %s1790_s17 = int_to_ptr.vmem [resolvable:$true] %s287_s17 }
  0x67   : > { %s1792_s14 = scalar_lea.sflag [#allocation3], %s275_s16  ;;  %s1443_s13 = scalar_lea.hbm %s1784_s29, 1024 }
  0x68   : > { %p1444_p7 = scmp.ne.s32.totalorder %s1784_s29, %s1443_s13  ;;  %p1445_p9 = pneg %p1786_p11 }
  0x69   : > { %s1448_s8 = scalar_lea.hbm %s2073_s0, 2048  ;;  %p1449_p2 = scmp.lt.u32.totalorder %s1784_s29, %s2073_s0 }
  0x6a   : > { %p1446_p12 = pnand %p1445_p9, %p1444_p7  ;;  %p1450_p1 = scmp.lt.u32.totalorder %s1448_s8, %s1443_s13 }
  0x6b   : > { %p1452_p8 = scmp.lt.u32.totalorder %s1443_s13, %s1784_s29 }
  0x6c   : > { %p1447_p0 = pneg %p1446_p12  ;;  %p1451_p4 = por %p1450_p1, %p1449_p2 }
  0x6e   : > { %p1453_p13 = por %p1452_p8, %p1451_p4 }
  0x70   : > { %p1454_p6 = pnand %p1453_p13, %p1447_p0 }
  0x72   : > { %1457 = shalt.err (!%p1454_p6)
}
  0x73   : > { %s1458_s16 = scalar_lea.vmem %s1790_s17, 1024  ;;  %s1588_s22 = smov [#allocation2]  }
  0x74   : > { %p1459_p10 = scmp.ne.s32.totalorder %s1790_s17, %s1458_s16  ;;  %s1463_s23 = sshll.u32 %s1588_s22, 4  ;;  %s1464_s23 = int_to_ptr.vmem [resolvable:$false] %s1463_s23 }
  0x75   : > { %s1465_s10 = scalar_lea.vmem %s1464_s23, 2048  ;;  %p1466_p12 = scmp.lt.s32.totalorder %s1790_s17, %s1464_s23 }
  0x76   : > { %p1461_p3 = pnand %p1459_p10, %p1445_p9  ;;  %p1467_p2 = scmp.lt.s32.totalorder %s1465_s10, %s1458_s16 }
  0x78   : > { %p1462_p7 = pneg %p1461_p3  ;;  %p1468_p1 = por %p1467_p2, %p1466_p12 }
  0x7a   : > { %p1469_p4 = pnand %p1468_p1, %p1462_p7 }
  0x7c   : > { %1472 = shalt.err (!%p1469_p4)
}
  0x7d   : > { %s1589_s13 = smov 256   ;;  %s1590_s15 = smov 16  }
  0x7e   : > { %1287 = dma.hbm_to_vmem [thread:$0]  (!%p1786_p11), %s1784_s29, 1024, %s1790_s17, %s1792_s14, %s1589_s13, %s1589_s13, %s1590_s15  }
  0x7f   : > { %p2096_p9 = scmp.ne.s32.totalorder %s2089_s9, 0 }
  0x80   : > { %s1823_s1 = sand.u32 (!%p2096_p9), 1, %s1571_s25   ;;  %p2097_p0 = scmp.ne.s32.totalorder (!%p2096_p9), %s2086_s30, 0 }
  0x81   : > { %299 = sbr.rel (%p2096_p9) target bundleno = 887 (0x377), region = 44  ;;  %s1156_s8 = sshll.u32 (!%p2096_p9), %s1823_s1, 6 }
  0x82   : > { %s302_s19 = scalar_lea.sflag (!%p2096_p9), [#allocation3], %s1823_s1  ;;  %s305_s21 = scalar_lea.vmem (!%p2096_p9), [#allocation2], %s1156_s8 }
  0x88   : > { %1546 = dma.done.wait (%p2097_p0), %s302_s19, 1024  }
  0x89   : > { %1548 = vsyncadd (%p2097_p0), %s302_s19, 4294966272  ;;  %p2098_p8 = scmp.eq.s32.totalorder %s1654_s28, 0 }
  0x8b   : > { %1550 = dma.done.wait (%p2098_p8), [#allocation6], 1152   ;;  %p2099_p11 = pmov %p2098_p8 }
  0x8c   : > { %p2100_p13 = pmov %p2098_p8 }
  0x8d   : > { %1552 = vsyncadd (%p2099_p11), [#allocation6], 4294966144 }
  0x8e   : > { %1554 = dma.done.wait (%p2100_p13), [#allocation9], 256   ;;  %p2101_p6 = pmov %p2098_p8 }
  0x8f   : > { %v1839_v0 = vld [vmem:[%s305_s21 + $0x8] sm:$0xff]  ;;  %v1841_v1 = vld [vmem:[%s305_s21 + $0x18] sm:$0xff]  ;;  %v1843_v2 = vld [vmem:[%s305_s21] sm:$0xff]  ;;  %vm611_vm0 = vcmask 130048   ;;  %vm780_vm1 = vcmask 261120   ;;  %vm390_vm2 = vcmask 130112  }
  0x90   : > { %1556 = vsyncadd (%p2101_p6), [#allocation9], 4294967040  ;;  %v415_v3 = vpack.c.bf16 %v1841_v1, %v1839_v0  ;;  %v1847_v4 = vld [vmem:[%s305_s21 + $0x10] sm:$0xff]  ;;  %v1346_v6 = vld [vmem:[#allocation5 + $0x4] ss:$8 sps:$4 sm:$0xff]   ;;  %vm401_vm3 = vcmask 1041409  }
  0x91   : > { %v414_v5 = vpack.c.bf16 %v1847_v4, %v1843_v2  ;;  %v1851_v7 = vld [vmem:[%s305_s21 + $0x28] sm:$0xff]  ;;  %v1853_v8 = vld [vmem:[%s305_s21 + $0x38] sm:$0xff]  ;;  %v1855_v9 = vld [vmem:[%s305_s21 + $0x20] sm:$0xff]  ;;  %490 = vmatprep.mubr.bf16.mxu0 %v1346_v6  ;;  %555 = vmatprep.mubr.bf16.mxu1 %v1346_v6  ;;  %v366_v6 = vmax.f32 %v1847_v4, %v1841_v1  ;;  %s1160_s29 = sshll.u32 %s1823_s1, 1  ;;  %vm404_vm4 = vcmask 123904   ;;  %s1193_s11 = sshll.u32 %s1654_s28, 5 }
  0x92   : > { %458 = vmatprep.subr.bf16.mxu0 %v415_v3  ;;  %v1857_v10 = vld [vmem:[%s305_s21 + $0x30] sm:$0xff]  ;;  %v417_v11 = vpack.c.bf16 %v1853_v8, %v1851_v7  ;;  %v1344_v13 = vld [vmem:[#allocation5] ss:$8 sps:$4 sm:$0xff]   ;;  %v1350_v17 = vld [vmem:[#allocation5 + $0x24] ss:$8 sps:$4 sm:$0xff]   ;;  %v369_v63 = vmax.f32 %v1855_v9, %v1851_v7  ;;  %v363_v3 = vmax.f32 %v1843_v2, %v1839_v0  ;;  %s345_s17 = scalar_lea.vmem [#allocation10], %s1160_s29  ;;  %s1948_s23 = scalar_lea.hbm %s2079_s6, %s1193_s11 }
  0x93   : > { %459 = vmatpush1.bf16.xpose.msra.mxu0 %v414_v5  ;;  %v416_v12 = vpack.c.bf16 %v1857_v10, %v1855_v9  ;;  %v1347_v14 = vld [vmem:[#allocation5 + $0x14] ss:$8 sps:$4 sm:$0xff]   ;;  %v1356_v15 = vld [vmem:[#allocation7] sm:$0xff]   ;;  %v1349_v16 = vld [vmem:[#allocation5 + $0x10] ss:$8 sps:$4 sm:$0xff]   ;;  %v372_v5 = vmax.f32 %v1857_v10, %v1853_v8  ;;  %s1001_s14 = sshll.u32 %s345_s17, 4  ;;  %s1002_s14 = int_to_ptr.vmem [resolvable:$true] %s1001_s14 }
  0x94   : > { %523 = vmatprep.subr.bf16.mxu1 %v417_v11  ;;  %1218 = vmatprep.subr.bf16.mxu0 %v1356_v15  ;;  %v1352_v18 = vld [vmem:[#allocation5 + $0x20] ss:$8 sps:$4 sm:$0xff]   ;;  %v1353_v19 = vld [vmem:[#allocation5 + $0x34] ss:$8 sps:$4 sm:$0xff]   ;;  %v1355_v20 = vld [vmem:[#allocation5 + $0x30] ss:$8 sps:$4 sm:$0xff]  }
  0x95   : > { %524 = vmatpush1.bf16.xpose.msra.mxu1 %v416_v12  ;;  %v1357_v21 = vld [vmem:[#allocation8] sm:$0xff]   ;;  %v1358_v62 = vld [vmem:[#allocation8 + $0x8] sm:$0xff]   ;;  %370 = vmax.xlane.f32.xlu1 %v369_v63  ;;  %v1170_v11 = vld [vmem:[%s2076_s3] ss:$0 sm:$0xff]  ;;  %s983_s10 = scalar_lea.sflag [#allocation4], %s1823_s1  ;;  %s1473_s13 = scalar_lea.vmem %s1002_s14, 32 }
  0x96   : > { %1236 = vmatprep.subr.bf16.mxu1 %v1357_v21  ;;  %364 = vmax.xlane.f32.xlu0 %v363_v3  ;;  %p1474_p10 = scmp.ne.s32.totalorder %s1002_s14, %s1473_s13  ;;  %s1591_s15 = smov [#allocation10]  }
  0x97   : > { %s1477_s8 = sshll.u32 %s1591_s15, 4  ;;  %s1478_s8 = int_to_ptr.vmem [resolvable:$false] %s1477_s8 }
  0x98   : > { %p1475_p3 = pnand %p1474_p10, %p1775_p5  ;;  %s1479_s19 = scalar_lea.vmem %s1478_s8, 64 }
  0x99   : > { %373 = vmax.xlane.f32.xlu1 %v372_v5  ;;  %p1480_p12 = scmp.lt.s32.totalorder %s1002_s14, %s1478_s8  ;;  %p1481_p2 = scmp.lt.s32.totalorder %s1479_s19, %s1473_s13 }
  0x9a   : > { %491 = vmatmul.mubr.bf16.vlgmr.msra.gmra.mrb[0].mxu0 %v1344_v13  ;;  %367 = vmax.xlane.f32.xlu0 %v366_v6  ;;  %p1476_p7 = pneg %p1475_p3 }
  0x9b   : > { %498 = vmatprep.mubr.bf16.mxu0 %v1347_v14  ;;  %1219 = vmatpush3.bf16.msra.mxu0 %v1356_v15  ;;  %p1482_p1 = por %p1481_p2, %p1480_p12 }
  0x9c   : > { %556 = vmatmul.mubr.bf16.vlgmr.msra.gmra.mrb[0].mxu1 %v1344_v13 }
  0x9d   : > { %563 = vmatprep.mubr.bf16.mxu1 %v1347_v14  ;;  %1237 = vmatpush3.bf16.msra.mxu1 %v1357_v21  ;;  %p1483_p4 = pnand %p1482_p1, %p1476_p7 }
  0x9e   : > { %1238 = vmatprep.subr.bf16.mxu1 %v1358_v62 }
  0xa1   : > { %1239 = vmatpush3.bf16.msra.mxu1 %v1358_v62 }
  0xa2   : > { %499 = vmatmul.mubr.bf16.gmra.mrb[4].mxu0 %v1349_v16 }
  0xa3   : > { %506 = vmatprep.mubr.bf16.mxu0 %v1350_v17 }
  0xa4   : > { %564 = vmatmul.mubr.bf16.gmra.mrb[4].mxu1 %v1349_v16 }
  0xa5   : > { %571 = vmatprep.mubr.bf16.mxu1 %v1350_v17 }
  0xaa   : > { %507 = vmatmul.mubr.bf16.gmra.mrb[8].mxu0 %v1352_v18 }
  0xab   : > { %514 = vmatprep.mubr.bf16.mxu0 %v1353_v19 }
  0xac   : > { %572 = vmatmul.mubr.bf16.gmra.mrb[8].mxu1 %v1352_v18 }
  0xad   : > { %579 = vmatprep.mubr.bf16.mxu1 %v1353_v19 }
  0xb2   : > { %515 = vmatmul.mubr.bf16.gmra.mrb[12].mxu0 %v1355_v20 }
  0xb4   : > { %580 = vmatmul.mubr.bf16.gmra.mrb[12].mxu1 %v1355_v20 }
 0x122   : > { %v371_v62 = vpop.xlane.xlu1 %370 }
 0x123   : > { %v365_v63 = vpop.xlane.xlu0 %364 }
 0x16d   : > { %v492_v22 = vpop.f32.mrb[0].mxu0 }
 0x16e   : > { %v494_v23 = vpop.f32.mrb[1].mxu0 }
 0x16f   : > { %v495_v24 = vpop.f32.mrb[2].mxu0  ;;  %v557_v27 = vpop.f32.mrb[0].mxu1 }
 0x170   : > { %v588_v25 = vpack.c.bf16 %v495_v24, %v492_v22  ;;  %v497_v26 = vpop.f32.mrb[3].mxu0  ;;  %v559_v28 = vpop.f32.mrb[1].mxu1 }
 0x171   : > { %v560_v29 = vpop.f32.mrb[2].mxu1 }
 0x172   : > { %1220 = vmatprep.mubr.msk.bf16.mxu0 %vm611_vm0, %v588_v25  ;;  %v592_v30 = vpack.c.bf16 %v560_v29, %v557_v27  ;;  %v562_v31 = vpop.f32.mrb[3].mxu1 }
 0x175   : > { %v500_v32 = vpop.f32.mrb[4].mxu0 }
 0x176   : > { %v502_v33 = vpop.f32.mrb[5].mxu0 }
 0x177   : > { %v503_v34 = vpop.f32.mrb[6].mxu0  ;;  %v565_v37 = vpop.f32.mrb[4].mxu1 }
 0x178   : > { %v589_v35 = vpack.c.bf16 %v503_v34, %v500_v32  ;;  %v505_v36 = vpop.f32.mrb[7].mxu0  ;;  %v567_v38 = vpop.f32.mrb[5].mxu1 }
 0x179   : > { %v568_v39 = vpop.f32.mrb[6].mxu1 }
 0x17a   : > { %1221 = vmatmul.mubr.msk.bf16.vlgmr.msra.gmra.mrb[16].mxu0 %vm611_vm0, %v589_v35  ;;  %v593_v40 = vpack.c.bf16 %v568_v39, %v565_v37  ;;  %v570_v41 = vpop.f32.mrb[7].mxu1 }
 0x17d   : > { %v508_v42 = vpop.f32.mrb[8].mxu0 }
 0x17e   : > { %v510_v43 = vpop.f32.mrb[9].mxu0 }
 0x17f   : > { %v511_v44 = vpop.f32.mrb[10].mxu0  ;;  %v573_v47 = vpop.f32.mrb[8].mxu1 }
 0x180   : > { %v590_v45 = vpack.c.bf16 %v511_v44, %v508_v42  ;;  %v513_v46 = vpop.f32.mrb[11].mxu0  ;;  %v575_v48 = vpop.f32.mrb[9].mxu1 }
 0x181   : > { %v576_v49 = vpop.f32.mrb[10].mxu1 }
 0x182   : > { %1224 = vmatprep.mubr.msk.bf16.mxu0 %vm611_vm0, %v590_v45  ;;  %v594_v50 = vpack.c.bf16 %v576_v49, %v573_v47  ;;  %v578_v51 = vpop.f32.mrb[11].mxu1 }
 0x185   : > { %v516_v52 = vpop.f32.mrb[12].mxu0 }
 0x186   : > { %v518_v53 = vpop.f32.mrb[13].mxu0 }
 0x187   : > { %v519_v54 = vpop.f32.mrb[14].mxu0  ;;  %v581_v57 = vpop.f32.mrb[12].mxu1 }
 0x188   : > { %v591_v55 = vpack.c.bf16 %v519_v54, %v516_v52  ;;  %v521_v56 = vpop.f32.mrb[15].mxu0  ;;  %v583_v58 = vpop.f32.mrb[13].mxu1 }
 0x189   : > { %v584_v59 = vpop.f32.mrb[14].mxu1 }
 0x18a   : > { %1225 = vmatmul.mubr.msk.bf16.gmra.mrb[20].mxu0 %vm611_vm0, %v591_v55  ;;  %v595_v60 = vpack.c.bf16 %v584_v59, %v581_v57  ;;  %v586_v61 = vpop.f32.mrb[15].mxu1 }
 0x18b   : > { %1228 = vmatprep.mubr.msk.bf16.mxu0 %vm611_vm0, %v592_v30 }
 0x192   : > { %1229 = vmatmul.mubr.msk.bf16.gmra.mrb[24].mxu0 %vm611_vm0, %v593_v40 }
 0x193   : > { %1232 = vmatprep.mubr.msk.bf16.mxu0 %vm611_vm0, %v594_v50 }
 0x19a   : > { %1233 = vmatmul.mubr.msk.bf16.gmra.mrb[28].mxu0 %vm611_vm0, %v595_v60  ;;  %v379_v60 = vlaneseq }
 0x19c   : > { %v380_v61 = vand.u32 127, %v379_v60  ;;  %v382_v3 = vshrl.u32 %v379_v60, 7 }
 0x19e   : > { %v385_v5 = vadd.s32 4294967288, %v380_v61  ;;  %v383_v6 = vsub.s32 %v380_v61, %v382_v3 }
 0x24d   : > { %v1222_v12 = vpop.f32.mrb[16].mxu0 }
 0x24e   : > { %v670_v13 = vpop.f32.mrb[17].mxu0  ;;  %v1884_v0 = vadd.f32 %v1222_v12, %v1170_v11  ;;  %v374_v12 = vpop.xlane.xlu1 %373 }
 0x24f   : > { %v1882_v7 = vadd.f32 %v1170_v11, %v670_v13  ;;  %v1223_v9 = vpop.f32.mrb[18].mxu0  ;;  %v368_v13 = vpop.xlane.xlu0 %367 }
 0x250   : > { %v1886_v2 = vadd.f32 %v1223_v9, %v1170_v11  ;;  %v673_v14 = vpop.f32.mrb[19].mxu0  ;;  %v735_v15 = vmax.f32 %v1884_v0, 0.0  ;;  %v395_v9 = vrot.slane %v371_v62, %v383_v6 }
 0x251   : > { %v1888_v8 = vadd.f32 %v1170_v11, %v673_v14  ;;  %v733_v4 = vmax.f32 %v1882_v7, 0.0  ;;  %v384_v14 = vrot.slane %v365_v63, %v383_v6 }
 0x252   : > { %v736_v1 = vmax.f32 %v1886_v2, 0.0 }
 0x253   : > { %v734_v10 = vmax.f32 %v1888_v8, 0.0 }
 0x254   : > { %v750_v17 = vpack.c.bf16 %v736_v1, %v735_v15 }
 0x255   : > { %v749_v16 = vpack.c.bf16 %v734_v10, %v733_v4 }
 0x257   : > { %1240 = vmatprep.mubr.msk.bf16.mxu1 %vm780_vm1, %v749_v16 }
 0x258   : > { %1241 = vmatmul.mubr.msk.bf16.vlgmr.msra.gmra.mrb[16].mxu1 %vm780_vm1, %v750_v17 }
 0x25d   : > { %v1226_v18 = vpop.f32.mrb[20].mxu0 }
 0x25e   : > { %v686_v19 = vpop.f32.mrb[21].mxu0  ;;  %v1898_v22 = vadd.f32 %v1226_v18, %v1170_v11 }
 0x25f   : > { %v1896_v20 = vadd.f32 %v1170_v11, %v686_v19  ;;  %v1227_v21 = vpop.f32.mrb[22].mxu0 }
 0x260   : > { %v1900_v23 = vadd.f32 %v1227_v21, %v1170_v11  ;;  %v689_v24 = vpop.f32.mrb[23].mxu0  ;;  %v739_v29 = vmax.f32 %v1898_v22, 0.0 }
 0x261   : > { %v1902_v25 = vadd.f32 %v1170_v11, %v689_v24  ;;  %v737_v27 = vmax.f32 %v1896_v20, 0.0 }
 0x262   : > { %v740_v26 = vmax.f32 %v1900_v23, 0.0 }
 0x263   : > { %v738_v28 = vmax.f32 %v1902_v25, 0.0 }
 0x264   : > { %v752_v32 = vpack.c.bf16 %v740_v26, %v739_v29 }
 0x265   : > { %v751_v30 = vpack.c.bf16 %v738_v28, %v737_v27  ;;  %v1230_v31 = vpop.f32.mrb[24].mxu0 }
 0x266   : > { %v702_v33 = vpop.f32.mrb[25].mxu0  ;;  %v1911_v36 = vadd.f32 %v1230_v31, %v1170_v11 }
 0x267   : > { %v1908_v34 = vadd.f32 %v1170_v11, %v702_v33  ;;  %v1231_v35 = vpop.f32.mrb[26].mxu0  ;;  %1244 = vmatprep.mubr.msk.bf16.mxu1 %vm780_vm1, %v751_v30 }
 0x268   : > { %v1913_v37 = vadd.f32 %v1231_v35, %v1170_v11  ;;  %v705_v38 = vpop.f32.mrb[27].mxu0  ;;  %1245 = vmatmul.mubr.msk.bf16.gmra.mrb[20].mxu1 %vm780_vm1, %v752_v32  ;;  %v743_v43 = vmax.f32 %v1911_v36, 0.0 }
 0x269   : > { %v1916_v39 = vadd.f32 %v1170_v11, %v705_v38  ;;  %v741_v41 = vmax.f32 %v1908_v34, 0.0 }
 0x26a   : > { %v744_v40 = vmax.f32 %v1913_v37, 0.0 }
 0x26b   : > { %v742_v42 = vmax.f32 %v1916_v39, 0.0 }
 0x26c   : > { %v754_v46 = vpack.c.bf16 %v744_v40, %v743_v43 }
 0x26d   : > { %v753_v44 = vpack.c.bf16 %v742_v42, %v741_v41  ;;  %v1234_v45 = vpop.f32.mrb[28].mxu0 }
 0x26e   : > { %v718_v47 = vpop.f32.mrb[29].mxu0  ;;  %v1925_v50 = vadd.f32 %v1234_v45, %v1170_v11 }
 0x26f   : > { %v1922_v48 = vadd.f32 %v1170_v11, %v718_v47  ;;  %v1235_v49 = vpop.f32.mrb[30].mxu0  ;;  %1248 = vmatprep.mubr.msk.bf16.mxu1 %vm780_vm1, %v753_v44 }
 0x270   : > { %v1927_v51 = vadd.f32 %v1235_v49, %v1170_v11  ;;  %v721_v52 = vpop.f32.mrb[31].mxu0  ;;  %1249 = vmatmul.mubr.msk.bf16.gmra.mrb[24].mxu1 %vm780_vm1, %v754_v46  ;;  %v747_v57 = vmax.f32 %v1925_v50, 0.0 }
 0x271   : > { %v1930_v53 = vadd.f32 %v1170_v11, %v721_v52  ;;  %v745_v55 = vmax.f32 %v1922_v48, 0.0  ;;  %v388_v11 = vsub.s32 %v385_v5, %v382_v3 }
 0x272   : > { %v748_v54 = vmax.f32 %v1927_v51, 0.0 }
 0x273   : > { %v746_v56 = vmax.f32 %v1930_v53, 0.0  ;;  %v399_v1 = vrot.slane %v374_v12, %v388_v11  ;;  %v389_v4 = vrot.slane %v368_v13, %v388_v11 }
 0x274   : > { %v756_v59 = vpack.c.bf16 %v748_v54, %v747_v57 }
 0x275   : > { %v755_v58 = vpack.c.bf16 %v746_v56, %v745_v55  ;;  %v400_v10 = vsel %vm390_vm2, %v399_v1, %v395_v9  ;;  %v391_v15 = vsel %vm390_vm2, %v389_v4, %v384_v14 }
 0x276   : > { %v402_v16 = vsel %vm401_vm3, %v400_v10, %v391_v15 }
 0x277   : > { %1252 = vmatprep.mubr.msk.bf16.mxu1 %vm780_vm1, %v755_v58  ;;  %405 = vst.msk [vmem:[%s345_s17] sm:$0x3] %vm404_vm4, %v402_v16 }
 0x278   : > { %1253 = vmatmul.mubr.msk.bf16.gmra.mrb[28].mxu1 %vm780_vm1, %v756_v59 }
 0x279   : > { %1486 = shalt.err (!%p1483_p4)
}
 0x27a   : > { %s1487_s21 = scalar_lea.hbm %s1948_s23, 32  ;;  %s1491_s17 = scalar_lea.hbm %s2079_s6, 64 }
 0x27b   : > { %p1488_p9 = scmp.ne.s32.totalorder %s1948_s23, %s1487_s21  ;;  %p1492_p11 = scmp.lt.u32.totalorder %s1948_s23, %s2079_s6 }
 0x27c   : > { %p1493_p13 = scmp.lt.u32.totalorder %s1491_s17, %s1487_s21  ;;  %p1495_p10 = scmp.lt.u32.totalorder %s1487_s21, %s1948_s23 }
 0x27d   : > { %p1489_p0 = pnand %p1488_p9, %p1775_p5 }
 0x27e   : > { %p1494_p6 = por %p1493_p13, %p1492_p11 }
 0x27f   : > { %p1490_p8 = pneg %p1489_p0 }
 0x280   : > { %p1496_p3 = por %p1495_p10, %p1494_p6 }
 0x282   : > { %p1497_p7 = pnand %p1496_p3, %p1490_p8 }
 0x284   : > { %1500 = shalt.err (!%p1497_p7)
}
 0x285   : > { %1270 = dma.vmem_to_hbm [thread:$0]  (%p1775_p5), %s1002_s14, 32, %s1948_s23, %s983_s10   ;;  %v1971_v17 = vld [vmem:[%s2078_s5] ss:$0 sm:$0xff]  ;;  %vm980_vm5 = vcmask 254976  }
 0x286   : > { %s352_s14 = scalar_lea.vmem [#allocation11], %s1160_s29  ;;  %s2028_s19 = scalar_lea.hbm %s2080_s7, %s1193_s11 }
 0x287   : > { %s1014_s23 = sshll.u32 %s352_s14, 4  ;;  %s988_s21 = scalar_lea.sflag [#allocation12], %s1823_s1  ;;  %s2030_s23 = int_to_ptr.vmem [resolvable:$true] %s1014_s23 }
 0x288   : > { %s1501_s29 = scalar_lea.vmem %s2030_s23, 32  ;;  %s1592_s28 = smov [#allocation11]  }
 0x289   : > { %p1502_p12 = scmp.ne.s32.totalorder %s2030_s23, %s1501_s29  ;;  %s1505_s30 = sshll.u32 %s1592_s28, 4  ;;  %s1506_s30 = int_to_ptr.vmem [resolvable:$false] %s1505_s30 }
 0x28a   : > { %s1507_s9 = scalar_lea.vmem %s1506_s30, 64  ;;  %p1508_p4 = scmp.lt.s32.totalorder %s2030_s23, %s1506_s30 }
 0x28b   : > { %p1503_p2 = pnand %p1502_p12, %p1775_p5  ;;  %p1509_p9 = scmp.lt.s32.totalorder %s1507_s9, %s1501_s29 }
 0x28d   : > { %p1504_p1 = pneg %p1503_p2  ;;  %p1510_p0 = por %p1509_p9, %p1508_p4 }
 0x28f   : > { %p1511_p8 = pnand %p1510_p0, %p1504_p1 }
 0x32b   : > { %v1242_v18 = vpop.f32.mrb[16].mxu1 }
 0x32c   : > { %v848_v19 = vadd.f32 %v1242_v18, %v1971_v17  ;;  %v839_v21 = vpop.f32.mrb[17].mxu1 }
 0x32d   : > { %v840_v24 = vadd.f32 %v1971_v17, %v839_v21  ;;  %v1243_v26 = vpop.f32.mrb[18].mxu1 }
 0x32e   : > { %v904_v27 = vadd.f32 %v848_v19, %v1884_v0  ;;  %v851_v28 = vadd.f32 %v1243_v26, %v1971_v17  ;;  %v842_v29 = vpop.f32.mrb[19].mxu1 }
 0x32f   : > { %v902_v30 = vadd.f32 %v840_v24, %v1882_v7  ;;  %v843_v31 = vadd.f32 %v1971_v17, %v842_v29 }
 0x330   : > { %v920_v32 = vmax.f32 %v904_v27, 0.0  ;;  %v905_v33 = vadd.f32 %v851_v28, %v1886_v2 }
 0x331   : > { %v918_v35 = vmax.f32 %v902_v30, 0.0  ;;  %v903_v38 = vadd.f32 %v843_v31, %v1888_v8 }
 0x332   : > { %v936_v40 = vsel %vm780_vm1, %v920_v32, -inf  ;;  %v921_v41 = vmax.f32 %v905_v33, 0.0 }
 0x333   : > { %v934_v42 = vsel %vm780_vm1, %v918_v35, -inf  ;;  %v919_v43 = vmax.f32 %v903_v38, 0.0 }
 0x334   : > { %v937_v0 = vmax.f32 %v934_v42, %v936_v40  ;;  %v938_v44 = vsel %vm780_vm1, %v921_v41, -inf }
 0x335   : > { %v935_v45 = vsel %vm780_vm1, %v919_v43, -inf }
 0x336   : > { %v939_v7 = vmax.f32 %v935_v45, %v938_v44 }
 0x33b   : > { %v1246_v46 = vpop.f32.mrb[20].mxu1 }
 0x33c   : > { %v864_v47 = vadd.f32 %v1246_v46, %v1971_v17  ;;  %v855_v49 = vpop.f32.mrb[21].mxu1 }
 0x33d   : > { %v856_v2 = vadd.f32 %v1971_v17, %v855_v49  ;;  %v1247_v52 = vpop.f32.mrb[22].mxu1 }
 0x33e   : > { %v908_v8 = vadd.f32 %v864_v47, %v1898_v22  ;;  %v867_v54 = vadd.f32 %v1247_v52, %v1971_v17  ;;  %v858_v55 = vpop.f32.mrb[23].mxu1 }
 0x33f   : > { %v906_v56 = vadd.f32 %v856_v2, %v1896_v20  ;;  %v859_v57 = vadd.f32 %v1971_v17, %v858_v55 }
 0x340   : > { %v909_v58 = vadd.f32 %v867_v54, %v1900_v23  ;;  %v924_v59 = vmax.f32 %v908_v8, 0.0 }
 0x341   : > { %v922_v60 = vmax.f32 %v906_v56, 0.0  ;;  %v907_v61 = vadd.f32 %v859_v57, %v1902_v25 }
 0x342   : > { %v925_v63 = vmax.f32 %v909_v58, 0.0  ;;  %v944_v12 = vsel %vm780_vm1, %v924_v59, -inf }
 0x343   : > { %v940_v62 = vsel %vm780_vm1, %v922_v60, -inf  ;;  %v923_v3 = vmax.f32 %v907_v61, 0.0  ;;  %v1250_v5 = vpop.f32.mrb[24].mxu1 }
 0x344   : > { %v941_v6 = vmax.f32 %v937_v0, %v940_v62  ;;  %v880_v22 = vadd.f32 %v1250_v5, %v1971_v17  ;;  %v871_v11 = vpop.f32.mrb[25].mxu1  ;;  %v946_v10 = vsel %vm780_vm1, %v925_v63, -inf }
 0x345   : > { %v942_v20 = vsel %vm780_vm1, %v923_v3, -inf  ;;  %v872_v13 = vadd.f32 %v1971_v17, %v871_v11  ;;  %v1251_v23 = vpop.f32.mrb[26].mxu1 }
 0x346   : > { %v945_v9 = vmax.f32 %v941_v6, %v944_v12  ;;  %v943_v14 = vmax.f32 %v939_v7, %v942_v20  ;;  %v912_v25 = vadd.f32 %v880_v22, %v1911_v36  ;;  %v883_v1 = vadd.f32 %v1251_v23, %v1971_v17  ;;  %v874_v4 = vpop.f32.mrb[27].mxu1 }
 0x347   : > { %v910_v15 = vadd.f32 %v872_v13, %v1908_v34  ;;  %v875_v16 = vadd.f32 %v1971_v17, %v874_v4 }
 0x348   : > { %v947_v18 = vmax.f32 %v943_v14, %v946_v10  ;;  %v928_v19 = vmax.f32 %v912_v25, 0.0  ;;  %v913_v21 = vadd.f32 %v883_v1, %v1913_v37 }
 0x349   : > { %v926_v24 = vmax.f32 %v910_v15, 0.0  ;;  %v911_v26 = vadd.f32 %v875_v16, %v1916_v39 }
 0x34a   : > { %v948_v27 = vmax.f32 %v945_v9, %v947_v18  ;;  %v957_v28 = vsel %vm780_vm1, %v928_v19, -inf  ;;  %v929_v36 = vmax.f32 %v913_v21, 0.0 }
 0x34b   : > { %v955_v29 = vsel %vm780_vm1, %v926_v24, -inf  ;;  %v927_v30 = vmax.f32 %v911_v26, 0.0  ;;  %v1254_v31 = vpop.f32.mrb[28].mxu1 }
 0x34c   : > { %v958_v32 = vmax.f32 %v955_v29, %v957_v28  ;;  %v959_v34 = vsel %vm780_vm1, %v929_v36, -inf  ;;  %v896_v33 = vadd.f32 %v1254_v31, %v1971_v17  ;;  %v887_v35 = vpop.f32.mrb[29].mxu1  ;;  %v949_v49 = vrot.slane %v948_v27, 4 }
 0x34d   : > { %v956_v38 = vsel %vm780_vm1, %v927_v30, -inf  ;;  %v888_v37 = vadd.f32 %v1971_v17, %v887_v35  ;;  %v1255_v40 = vpop.f32.mrb[30].mxu1 }
 0x34e   : > { %v960_v39 = vmax.f32 %v956_v38, %v959_v34  ;;  %v916_v41 = vadd.f32 %v896_v33, %v1925_v50  ;;  %v899_v42 = vadd.f32 %v1255_v40, %v1971_v17  ;;  %v890_v43 = vpop.f32.mrb[31].mxu1 }
 0x34f   : > { %v914_v0 = vadd.f32 %v888_v37, %v1922_v48  ;;  %v891_v44 = vadd.f32 %v1971_v17, %v890_v43  ;;  %v950_v48 = vmax.f32 %v948_v27, %v949_v49 }
 0x350   : > { %v917_v45 = vadd.f32 %v899_v42, %v1927_v51  ;;  %v932_v7 = vmax.f32 %v916_v41, 0.0 }
 0x351   : > { %v930_v46 = vmax.f32 %v914_v0, 0.0  ;;  %v915_v47 = vadd.f32 %v891_v44, %v1930_v53  ;;  %v951_v58 = vrot.slane %v950_v48, 2 }
 0x352   : > { %v933_v52 = vmax.f32 %v917_v45, 0.0  ;;  %v965_v50 = vsel %vm780_vm1, %v932_v7, -inf }
 0x353   : > { %v961_v2 = vsel %vm780_vm1, %v930_v46, -inf  ;;  %v931_v8 = vmax.f32 %v915_v47, 0.0  ;;  %v952_v60 = vmax.f32 %v950_v48, %v951_v58 }
 0x354   : > { %v962_v54 = vmax.f32 %v958_v32, %v961_v2  ;;  %v967_v51 = vsel %vm780_vm1, %v933_v52, -inf }
 0x355   : > { %v963_v55 = vsel %vm780_vm1, %v931_v8, -inf  ;;  %v953_v63 = vrot.slane %v952_v60, 1 }
 0x356   : > { %v966_v56 = vmax.f32 %v962_v54, %v965_v50  ;;  %v964_v17 = vmax.f32 %v960_v39, %v963_v55 }
 0x357   : > { %v954_v6 = vmax.f32 %v952_v60, %v953_v63 }
 0x358   : > { %v968_v57 = vmax.f32 %v964_v17, %v967_v51 }
 0x35a   : > { %v969_v53 = vmax.f32 %v966_v56, %v968_v57 }
 0x35c   : > { %v970_v59 = vrot.slane %v969_v53, 4 }
 0x35e   : > { %v971_v61 = vmax.f32 %v969_v53, %v970_v59 }
 0x360   : > { %v972_v62 = vrot.slane %v971_v61, 2 }
 0x362   : > { %v973_v3 = vmax.f32 %v971_v61, %v972_v62 }
 0x364   : > { %v974_v5 = vrot.slane %v973_v3, 1 }
 0x366   : > { %v975_v22 = vmax.f32 %v973_v3, %v974_v5 }
 0x368   : > { %v978_v11 = vsel %vm401_vm3, %v975_v22, %v954_v6 }
 0x369   : > { %981 = vst.msk [vmem:[%s352_s14] sm:$0x3] %vm980_vm5, %v978_v11 }
 0x36a   : > { %1514 = shalt.err (!%p1511_p8)
}
 0x36b   : > { %s1515_s1 = scalar_lea.hbm %s2028_s19, 32  ;;  %s1519_s16 = scalar_lea.hbm %s2080_s7, 64 }
 0x36c   : > { %p1516_p11 = scmp.ne.s32.totalorder %s2028_s19, %s1515_s1  ;;  %p1520_p10 = scmp.lt.u32.totalorder %s2028_s19, %s2080_s7 }
 0x36d   : > { %p1521_p3 = scmp.lt.u32.totalorder %s1519_s16, %s1515_s1  ;;  %p1523_p12 = scmp.lt.u32.totalorder %s1515_s1, %s2028_s19 }
 0x36e   : > { %p1517_p13 = pnand %p1516_p11, %p1775_p5 }
 0x36f   : > { %p1522_p7 = por %p1521_p3, %p1520_p10 }
 0x370   : > { %p1518_p6 = pneg %p1517_p13 }
 0x371   : > { %p1524_p2 = por %p1523_p12, %p1522_p7 }
 0x373   : > { %p1525_p1 = pnand %p1524_p2, %p1518_p6 }
 0x375   : > { %1528 = shalt.err (!%p1525_p1)
}
 0x376   : > { %1271 = dma.vmem_to_hbm [thread:$0]  (%p1775_p5), %s2030_s23, 32, %s2028_s19, %s988_s21  }
 0x377 PF: > { %s2102_s15 = sld [smem:[#allocation18_spill]]  ;;  %s1026_s14 = sand.u32 1, %s1567_s24  }
 0x378   : > { %p2104_p9 = scmp.ge.s32.totalorder %s1579_s27, 2  ;;  %s1027_s10 = scalar_lea.sflag [#allocation4], %s1026_s14 }
 0x37d   : > { %p2103_p4 = scmp.ne.s32.totalorder %s2102_s15, 0 }
 0x37f   : > { %p1289_p0 = pnand %p2104_p9, %p2103_p4 }
 0x381   : > { %1558 = dma.done.wait (!%p1289_p0), %s1027_s10, 32  }
 0x382   : > { %1560 = vsyncadd (!%p1289_p0), %s1027_s10, 4294967264  ;;  %s1036_s8 = scalar_lea.sflag [#allocation12], %s1026_s14 }
 0x383   : > { %1562 = dma.done.wait (!%p1289_p0), %s1036_s8, 32  }
 0x384   : > { %1564 = vsyncadd (!%p1289_p0), %s1036_s8, 4294967264  ;;  %p26_p5 = scmp.ge.s32.totalorder %s1743_s18, 4   ;;  %s2105_s24 = smov %s1571_s25 }
 0x385   : > { %s2106_s25 = smov %s1575_s26  ;;  %s2107_s26 = smov %s1771_s12 }
 0x386   : > { %s2108_s27 = smov %s1743_s18  ;;  %28 = sbr.rel (!%p26_p5) target bundleno = 11 (0xb), region = 118 }
 0x38d   :  { %1041 = vsyncpa [#allocation3], 1 }
 0x38e   :  { %1043 = vsyncpa [#allocation3 + $0x1], 1 }
 0x38f   :  { %1044 = vsyncpa [#allocation6], 1 }
 0x390   :  { %1045 = vsyncpa [#allocation9], 1 }
 0x391   :  { %1046 = vsyncpa [#allocation4], 1 }
 0x392   :  { %1048 = vsyncpa [#allocation4 + $0x1], 1 }
 0x393   :  { %1049 = vsyncpa [#allocation12], 1 }
 0x394   :  { %1051 = vsyncpa [#allocation12 + $0x1], 1 }

</bundles_post_ra>
